<compile_context>
chip_gen: v5e
topology: v5e:2x2
jax: 0.10.0
libtpu: 0.0.40
codegen_flags: <defaults>
</compile_context>

<pallas_src>
import functools
import math

import numpy as np
import jax
import jax.numpy as jnp
from jax import lax
from jax.experimental import pallas as pl
from jax.experimental.pallas import tpu as pltpu

OUT_DIM = 5        # nn.Linear(hidden_dim, 5)
OUT_PAD = 128      # lane-dense padded output width


# -----------------------------------------------------------------------------
# Kernel: one encoder layer per grid step; projection/reduction in pro/epilogue
# -----------------------------------------------------------------------------

def _encoder_kernel(
    x_ref,          # (N, input_dim)    f32
    proj_w_ref,     # (input_dim, h)    f32/bf16
    proj_b_ref,     # (1, h)            f32
    in_w_ref,       # (h, 3h)           f32/bf16   (layer block, scale folded in q cols)
    in_b_ref,       # (1, 3h)           f32        (scale folded in q part)
    out_w_ref,      # (h, h)            f32/bf16
    out_b_ref,      # (1, h)            f32
    ln1_g_ref,      # (1, h)            f32
    ln1_b_ref,      # (1, h)            f32
    lin1_w_ref,     # (h, ffn)          f32/bf16
    lin1_b_ref,     # (1, ffn)          f32
    lin2_w_ref,     # (ffn, h)          f32/bf16
    lin2_b_ref,     # (1, h)            f32
    ln2_g_ref,      # (1, h)            f32
    ln2_b_ref,      # (1, h)            f32
    red_w_ref,      # (h, OUT_PAD)      f32/bf16  (zero-padded past col 5)
    red_b_ref,      # (1, OUT_PAD)      f32       (zero-padded past col 5)
    o_ref,          # (N, OUT_PAD)      f32
    x_scratch,      # (N, h)            f32 VMEM carry across layers
    *, num_heads, eps):

    l = pl.program_id(0)
    n_layers = pl.num_programs(0)

    def layernorm(y, g, b):
        mu = jnp.mean(y, axis=-1, keepdims=True)
        yc = y - mu
        var = jnp.mean(yc * yc, axis=-1, keepdims=True)
        return yc * lax.rsqrt(var + eps) * g + b

    # ---- prologue: input_projection (only on the first grid step) ----
    @pl.when(l == 0)
    def _():
        pw = proj_w_ref[...]
        xp = jnp.dot(x_ref[...].astype(pw.dtype), pw,
                     preferred_element_type=jnp.float32)
        x_scratch[...] = xp + proj_b_ref[...]

    x = x_scratch[...]                         # (N, h) f32 carry
    n, h = x.shape
    d = h // num_heads

    # ---- self-attention: fused QKV, heads unrolled, no concat / no k.T ----
    in_w = in_w_ref[...]
    qkv = jnp.dot(x.astype(in_w.dtype), in_w,
                  preferred_element_type=jnp.float32) + in_b_ref[...]   # (N, 3h)

    out_w = out_w_ref[...]
    attn = jnp.zeros((n, h), jnp.float32)
    for hh in range(num_heads):
        q = qkv[:, hh * d:(hh + 1) * d]                  # 1/sqrt(d) pre-folded
        k = qkv[:, h + hh * d:h + (hh + 1) * d]
        v = qkv[:, 2 * h + hh * d:2 * h + (hh + 1) * d]
        s = lax.dot_general(q, k, dimension_numbers=(((1,), (1,)), ((), ())),
                            preferred_element_type=jnp.float32)         # (N, N)
        s = s - jnp.max(s, axis=-1, keepdims=True)
        p = jnp.exp(s)
        p = p / jnp.sum(p, axis=-1, keepdims=True)                      # exact softmax
        hv = jnp.dot(p, v, preferred_element_type=jnp.float32)          # (N, d)
        # accumulate through a sublane-aligned row slice of the output projection
        attn = attn + jnp.dot(hv.astype(out_w.dtype),
                              out_w[hh * d:(hh + 1) * d, :],
                              preferred_element_type=jnp.float32)
    attn = attn + out_b_ref[...]

    x = layernorm(x + attn, ln1_g_ref[...], ln1_b_ref[...])

    # ---- feed-forward (bf16 weights, f32 accumulation, f32 elementwise) ----
    w1 = lin1_w_ref[...]
    ff = jnp.dot(x.astype(w1.dtype), w1, preferred_element_type=jnp.float32)
    ff = jnp.maximum(ff + lin1_b_ref[...], 0.0)
    w2 = lin2_w_ref[...]
    ff = jnp.dot(ff.astype(w2.dtype), w2, preferred_element_type=jnp.float32)
    ff = ff + lin2_b_ref[...]
    x = layernorm(x + ff, ln2_g_ref[...], ln2_b_ref[...])

    x_scratch[...] = x

    # ---- epilogue: dim_reduction, lane-dense padded store ----
    @pl.when(l == n_layers - 1)
    def _():
        rw = red_w_ref[...]
        y = jnp.dot(x.astype(rw.dtype), rw, preferred_element_type=jnp.float32)
        o_ref[...] = (y + red_b_ref[...]).astype(o_ref.dtype)


# -----------------------------------------------------------------------------
# Wrapper
# -----------------------------------------------------------------------------

_PER_LAYER_KEYS = ("in_w", "in_b", "out_w", "out_b", "ln1_g", "ln1_b",
                   "lin1_w", "lin1_b", "lin2_w", "lin2_b", "ln2_g", "ln2_b")
_CONST_KEYS = ("proj_w", "proj_b", "red_w", "red_b")


def transformer_forward(x, p, *, num_heads, eps=1e-5, out_dim=OUT_DIM):
    N = x.shape[0]
    L = p["in_w"].shape[0]
    h = p["proj_w"].shape[1]
    out_pad = p["red_w"].shape[1]

    def const_spec(arr):
        return pl.BlockSpec(arr.shape, lambda l: (0,) * arr.ndim)

    def layer_spec(arr):
        return pl.BlockSpec((None,) + tuple(arr.shape[1:]),
                            lambda l: (l,) + (0,) * (arr.ndim - 1))

    in_specs = [
        const_spec(x),
        const_spec(p["proj_w"]), const_spec(p["proj_b"]),
        layer_spec(p["in_w"]), layer_spec(p["in_b"]),
        layer_spec(p["out_w"]), layer_spec(p["out_b"]),
        layer_spec(p["ln1_g"]), layer_spec(p["ln1_b"]),
        layer_spec(p["lin1_w"]), layer_spec(p["lin1_b"]),
        layer_spec(p["lin2_w"]), layer_spec(p["lin2_b"]),
        layer_spec(p["ln2_g"]), layer_spec(p["ln2_b"]),
        const_spec(p["red_w"]), const_spec(p["red_b"]),
    ]
    out_specs = pl.BlockSpec((N, out_pad), lambda l: (0, 0))

    # VMEM budget: constants + 2x (double-buffered) one-layer weight block,
    # with margin; capped safely below v7x's 64 MiB physical VMEM.
    MiB = 1 << 20
    nbytes = lambda a: a.size * a.dtype.itemsize
    per_layer_bytes = sum(nbytes(p[k]) // L for k in _PER_LAYER_KEYS)
    const_bytes = (nbytes(x) + sum(nbytes(p[k]) for k in _CONST_KEYS)
                   + N * out_pad * 4 + N * h * 4)
    est = const_bytes + 2 * per_layer_bytes
    vmem_limit = int(min(max(4 * est, 16 * MiB), 48 * MiB))

    kernel = functools.partial(_encoder_kernel, num_heads=num_heads, eps=eps)

    y = pl.pallas_call(
        kernel,
        grid=(L,),
        in_specs=in_specs,
        out_specs=out_specs,
        out_shape=jax.ShapeDtypeStruct((N, out_pad), jnp.float32),
        scratch_shapes=[pltpu.VMEM((N, h), jnp.float32)],
        compiler_params=pltpu.CompilerParams(
            dimension_semantics=("arbitrary",),
            vmem_limit_bytes=vmem_limit),
    )(
        x,
        p["proj_w"], p["proj_b"],
        p["in_w"], p["in_b"],
        p["out_w"], p["out_b"],
        p["ln1_g"], p["ln1_b"],
        p["lin1_w"], p["lin1_b"],
        p["lin2_w"], p["lin2_b"],
        p["ln2_g"], p["ln2_b"],
        p["red_w"], p["red_b"],
    )
    return y[:, :out_dim]


# -----------------------------------------------------------------------------
# Raw parameter init (natural PyTorch-like shapes), kernel-layout preparation,
# and a float64 NumPy reference (PyTorch post-LN encoder semantics).
# -----------------------------------------------------------------------------

def init_raw_params(key, input_dim, hidden, num_layers, ffn_dim, out_dim=OUT_DIM):
    def u(k, shape):
        return jax.random.uniform(k, shape, jnp.float32, -0.1, 0.1)

    keys = iter(jax.random.split(key, 4 + 8 * num_layers))
    p = {
        "proj_w": u(next(keys), (input_dim, hidden)),
        "proj_b": u(next(keys), (hidden,)),
        "red_w": u(next(keys), (hidden, out_dim)),
        "red_b": u(next(keys), (out_dim,)),
    }
    stacks = {k: [] for k in ("in_w", "in_b", "out_w", "out_b",
                              "lin1_w", "lin1_b", "lin2_w", "lin2_b")}
    for _ in range(num_layers):
        stacks["in_w"].append(u(next(keys), (hidden, 3 * hidden)))
        stacks["in_b"].append(u(next(keys), (3 * hidden,)))
        stacks["out_w"].append(u(next(keys), (hidden, hidden)))
        stacks["out_b"].append(u(next(keys), (hidden,)))
        stacks["lin1_w"].append(u(next(keys), (hidden, ffn_dim)))
        stacks["lin1_b"].append(u(next(keys), (ffn_dim,)))
        stacks["lin2_w"].append(u(next(keys), (ffn_dim, hidden)))
        stacks["lin2_b"].append(u(next(keys), (hidden,)))
    p.update({k: jnp.stack(v) for k, v in stacks.items()})
    p.update({
        "ln1_g": jnp.ones((num_layers, hidden), jnp.float32),
        "ln1_b": jnp.zeros((num_layers, hidden), jnp.float32),
        "ln2_g": jnp.ones((num_layers, hidden), jnp.float32),
        "ln2_b": jnp.zeros((num_layers, hidden), jnp.float32),
    })
    return p


def prepare_params(raw, num_heads, out_pad=OUT_PAD, weights_dtype=jnp.bfloat16):
    """Kernel layout: 1/sqrt(d) folded into q-columns of in_w/in_b, biases as
    (L,1,F)/(1,F), dim_reduction padded to `out_pad` lanes, and all six matmul
    weight matrices cast to `weights_dtype` (bf16 by default; biases/LN stay f32)."""
    h = raw["proj_w"].shape[1]
    L = raw["in_w"].shape[0]
    ffn = raw["lin1_w"].shape[2]
    out_dim = raw["red_w"].shape[1]
    scale = 1.0 / math.sqrt(h // num_heads)
    wd = weights_dtype

    in_w = raw["in_w"].at[:, :, :h].multiply(scale)
    in_b = raw["in_b"].at[:, :h].multiply(scale)

    return {
        "proj_w": raw["proj_w"].astype(wd),
        "proj_b": raw["proj_b"].reshape(1, h),
        "in_w": in_w.astype(wd),
        "in_b": in_b.reshape(L, 1, 3 * h),
        "out_w": raw["out_w"].astype(wd),
        "out_b": raw["out_b"].reshape(L, 1, h),
        "ln1_g": raw["ln1_g"].reshape(L, 1, h),
        "ln1_b": raw["ln1_b"].reshape(L, 1, h),
        "lin1_w": raw["lin1_w"].astype(wd),
        "lin1_b": raw["lin1_b"].reshape(L, 1, ffn),
        "lin2_w": raw["lin2_w"].astype(wd),
        "lin2_b": raw["lin2_b"].reshape(L, 1, h),
        "ln2_g": raw["ln2_g"].reshape(L, 1, h),
        "ln2_b": raw["ln2_b"].reshape(L, 1, h),
        "red_w": jnp.pad(raw["red_w"], ((0, 0), (0, out_pad - out_dim))).astype(wd),
        "red_b": jnp.pad(raw["red_b"], (0, out_pad - out_dim)).reshape(1, out_pad),
    }


def reference_forward(x, raw, num_heads, eps=1e-5):
    """float64 NumPy reference with PyTorch TransformerEncoder(Layer) semantics
    (post-LN, ReLU FFN, dropout=identity). Used for numerical parity tests."""
    f64 = lambda a: np.asarray(a, np.float64)

    def ln(y, g, b):
        mu = y.mean(-1, keepdims=True)
        var = ((y - mu) ** 2).mean(-1, keepdims=True)
        return (y - mu) / np.sqrt(var + eps) * f64(g) + f64(b)

    x = f64(x)
    h = raw["proj_w"].shape[1]
    d = h // num_heads
    L = raw["in_w"].shape[0]

    y = x @ f64(raw["proj_w"]) + f64(raw["proj_b"])
    for l in range(L):
        qkv = y @ f64(raw["in_w"][l]) + f64(raw["in_b"][l])
        q, k, v = qkv[:, :h], qkv[:, h:2 * h], qkv[:, 2 * h:]
        heads = []
        for hh in range(num_heads):
            qh = q[:, hh * d:(hh + 1) * d] / math.sqrt(d)
            kh = k[:, hh * d:(hh + 1) * d]
            vh = v[:, hh * d:(hh + 1) * d]
            s = qh @ kh.T
            s = s - s.max(-1, keepdims=True)
            pm = np.exp(s)
            pm = pm / pm.sum(-1, keepdims=True)
            heads.append(pm @ vh)
        attn = np.concatenate(heads, -1) @ f64(raw["out_w"][l]) + f64(raw["out_b"][l])
        y = ln(y + attn, raw["ln1_g"][l], raw["ln1_b"][l])
        ff = np.maximum(y @ f64(raw["lin1_w"][l]) + f64(raw["lin1_b"][l]), 0.0)
        ff = ff @ f64(raw["lin2_w"][l]) + f64(raw["lin2_b"][l])
        y = ln(y + ff, raw["ln2_g"][l], raw["ln2_b"][l])
    return y @ f64(raw["red_w"]) + f64(raw["red_b"])


if __name__ == "__main__":
    # Small shapes consistent with the module defaults:
    #   N=8 tokens, input_dim=16, hidden_dim=64, num_heads=4, num_layers=2,
    #   dim_feedforward=2048 (PyTorch TransformerEncoderLayer default).
    N, INPUT_DIM, HIDDEN, HEADS, LAYERS, FFN = 8, 16, 64, 4, 2, 2048

    key = jax.random.PRNGKey(0)
    k_x, k_p = jax.random.split(key)
    x = jax.random.normal(k_x, (N, INPUT_DIM), jnp.float32)
    raw = init_raw_params(k_p, INPUT_DIM, HIDDEN, LAYERS, FFN)

    # TODO(synk): dropout layers are identity here (eval-mode semantics).
    ref = reference_forward(np.asarray(x), {k: np.asarray(v) for k, v in raw.items()}, HEADS)

    fwd = jax.jit(functools.partial(transformer_forward, num_heads=HEADS))

    # f32-weight path: numerical parity with the reference.
    p_f32 = prepare_params(raw, HEADS, weights_dtype=jnp.float32)
    out_f32 = jax.block_until_ready(fwd(x, p_f32))
    assert out_f32.shape == (N, OUT_DIM) and out_f32.dtype == jnp.float32
    err_f32 = float(np.max(np.abs(np.asarray(out_f32, np.float64) - ref)))
    assert err_f32 < 3e-2, f"f32-weight path parity failed: max abs err {err_f32}"

    # Default bf16-weight path (halves the dominant weight-DMA bytes); f32
    # accumulation + f32 LN/softmax keep it numerically close to the reference.
    p_bf16 = prepare_params(raw, HEADS, weights_dtype=jnp.bfloat16)
    out_bf16 = jax.block_until_ready(fwd(x, p_bf16))
    assert out_bf16.shape == (N, OUT_DIM) and out_bf16.dtype == jnp.float32
    err_bf16 = float(np.max(np.abs(np.asarray(out_bf16, np.float64) - ref)))
    assert err_bf16 < 1.5e-1, f"bf16-weight path parity failed: max abs err {err_bf16}"

    print("KERNEL_OK")
</pallas_src>

<mosaic_0001>
module attributes {stable_mosaic.version = 11 : i64} {
  func.func @_encoder_kernel(%arg0: i32, %arg1: memref<8x16xf32, #tpu.memory_space<vmem>>, %arg2: memref<16x64xf32, #tpu.memory_space<vmem>>, %arg3: memref<1x64xf32, #tpu.memory_space<vmem>>, %arg4: memref<1x64x192xf32, #tpu.memory_space<vmem>>, %arg5: memref<1x1x192xf32, #tpu.memory_space<vmem>>, %arg6: memref<1x64x64xf32, #tpu.memory_space<vmem>>, %arg7: memref<1x1x64xf32, #tpu.memory_space<vmem>>, %arg8: memref<1x1x64xf32, #tpu.memory_space<vmem>>, %arg9: memref<1x1x64xf32, #tpu.memory_space<vmem>>, %arg10: memref<1x64x2048xf32, #tpu.memory_space<vmem>>, %arg11: memref<1x1x2048xf32, #tpu.memory_space<vmem>>, %arg12: memref<1x2048x64xf32, #tpu.memory_space<vmem>>, %arg13: memref<1x1x64xf32, #tpu.memory_space<vmem>>, %arg14: memref<1x1x64xf32, #tpu.memory_space<vmem>>, %arg15: memref<1x1x64xf32, #tpu.memory_space<vmem>>, %arg16: memref<64x128xf32, #tpu.memory_space<vmem>>, %arg17: memref<1x128xf32, #tpu.memory_space<vmem>>, %arg18: memref<8x128xf32, #tpu.memory_space<vmem>>, %arg19: memref<8x64xf32, #tpu.memory_space<vmem>>) attributes {dimension_semantics = [#tpu.dimension_semantics<arbitrary>], iteration_bounds = array<i64: 2>, scalar_prefetch = 0 : i64, scratch_operands = 1 : i64, tpu.core_type = #tpu.core_type<tc>, window_params = [{pipeline_mode = #tpu.pipeline_mode<synchronous>, transform_indices = @transform_0, window_bounds = array<i64: 8, 16>}, {pipeline_mode = #tpu.pipeline_mode<synchronous>, transform_indices = @transform_1, window_bounds = array<i64: 16, 64>}, {pipeline_mode = #tpu.pipeline_mode<synchronous>, transform_indices = @transform_2, window_bounds = array<i64: 1, 64>}, {transform_indices = @transform_3, window_bounds = array<i64: 1, 64, 192>}, {transform_indices = @transform_4, window_bounds = array<i64: 1, 1, 192>}, {transform_indices = @transform_5, window_bounds = array<i64: 1, 64, 64>}, {transform_indices = @transform_6, window_bounds = array<i64: 1, 1, 64>}, {transform_indices = @transform_7, window_bounds = array<i64: 1, 1, 64>}, {transform_indices = @transform_8, window_bounds = array<i64: 1, 1, 64>}, {transform_indices = @transform_9, window_bounds = array<i64: 1, 64, 2048>}, {transform_indices = @transform_10, window_bounds = array<i64: 1, 1, 2048>}, {transform_indices = @transform_11, window_bounds = array<i64: 1, 2048, 64>}, {transform_indices = @transform_12, window_bounds = array<i64: 1, 1, 64>}, {transform_indices = @transform_13, window_bounds = array<i64: 1, 1, 64>}, {transform_indices = @transform_14, window_bounds = array<i64: 1, 1, 64>}, {pipeline_mode = #tpu.pipeline_mode<synchronous>, transform_indices = @transform_15, window_bounds = array<i64: 64, 128>}, {pipeline_mode = #tpu.pipeline_mode<synchronous>, transform_indices = @transform_16, window_bounds = array<i64: 1, 128>}, {pipeline_mode = #tpu.pipeline_mode<synchronous>, transform_indices = @transform_17, window_bounds = array<i64: 8, 128>}]} {
    %c0_i32 = arith.constant 0 : i32
    %0 = arith.cmpi eq, %arg0, %c0_i32 : i32
    %1 = arith.extui %0 : i1 to i32
    %c0_i32_0 = arith.constant 0 : i32
    %2 = arith.cmpi ne, %1, %c0_i32_0 : i32
    scf.if %2 {
      %c0_75 = arith.constant 0 : index
      %c0_76 = arith.constant 0 : index
      %156 = vector.load %arg2[%c0_75, %c0_76] : memref<16x64xf32, #tpu.memory_space<vmem>>, vector<16x64xf32>
      %c0_77 = arith.constant 0 : index
      %c0_78 = arith.constant 0 : index
      %157 = vector.load %arg1[%c0_77, %c0_78] : memref<8x16xf32, #tpu.memory_space<vmem>>, vector<8x16xf32>
      %cst_79 = arith.constant dense<0.000000e+00> : vector<8x64xf32>
      %158 = tpu.matmul %157, %156, %cst_79 {dimension_numbers = #tpu.dot_dimension_numbers<[1], [0], [0], [1], [0, 0, 1, 1], [], []>} : vector<8x16xf32>, vector<16x64xf32>, vector<8x64xf32> -> vector<8x64xf32>
      %c0_80 = arith.constant 0 : index
      %c0_81 = arith.constant 0 : index
      %159 = vector.load %arg3[%c0_80, %c0_81] : memref<1x64xf32, #tpu.memory_space<vmem>>, vector<1x64xf32>
      %160 = vector.broadcast %159 : vector<1x64xf32> to vector<8x64xf32>
      %161 = arith.addf %158, %160 : vector<8x64xf32>
      %c0_82 = arith.constant 0 : index
      %c0_83 = arith.constant 0 : index
      %162 = vector.load %arg19[%c0_82, %c0_83] : memref<8x64xf32, #tpu.memory_space<vmem>>, vector<8x64xf32>
      tpu.vector_store %arg19[%c0_82, %c0_83], %161 {strides = array<i32>} : memref<8x64xf32, #tpu.memory_space<vmem>>, vector<8x64xf32>,
    } else {
    }
    %c0 = arith.constant 0 : index
    %c0_1 = arith.constant 0 : index
    %3 = vector.load %arg19[%c0, %c0_1] : memref<8x64xf32, #tpu.memory_space<vmem>>, vector<8x64xf32>
    %c0_2 = arith.constant 0 : index
    %c0_3 = arith.constant 0 : index
    %c0_4 = arith.constant 0 : index
    %4 = vector.load %arg4[%c0_2, %c0_3, %c0_4] : memref<1x64x192xf32, #tpu.memory_space<vmem>>, vector<1x64x192xf32>
    %5 = vector.shape_cast %4 : vector<1x64x192xf32> to vector<64x192xf32>
    %cst = arith.constant dense<0.000000e+00> : vector<8x192xf32>
    %6 = tpu.matmul %3, %5, %cst {dimension_numbers = #tpu.dot_dimension_numbers<[1], [0], [0], [1], [0, 0, 1, 1], [], []>} : vector<8x64xf32>, vector<64x192xf32>, vector<8x192xf32> -> vector<8x192xf32>
    %c0_5 = arith.constant 0 : index
    %c0_6 = arith.constant 0 : index
    %c0_7 = arith.constant 0 : index
    %7 = vector.load %arg5[%c0_5, %c0_6, %c0_7] : memref<1x1x192xf32, #tpu.memory_space<vmem>>, vector<1x1x192xf32>
    %8 = vector.shape_cast %7 : vector<1x1x192xf32> to vector<1x192xf32>
    %9 = vector.broadcast %8 : vector<1x192xf32> to vector<8x192xf32>
    %10 = arith.addf %6, %9 : vector<8x192xf32>
    %c0_8 = arith.constant 0 : index
    %c0_9 = arith.constant 0 : index
    %c0_10 = arith.constant 0 : index
    %11 = vector.load %arg6[%c0_8, %c0_9, %c0_10] : memref<1x64x64xf32, #tpu.memory_space<vmem>>, vector<1x64x64xf32>
    %12 = vector.shape_cast %11 : vector<1x64x64xf32> to vector<64x64xf32>
    %cst_11 = arith.constant 0.000000e+00 : f32
    %13 = vector.broadcast %cst_11 : f32 to vector<8x64xf32>
    %14 = vector.extract_strided_slice %10 {offsets = [0, 0], sizes = [8, 16], strides = [1, 1]} : vector<8x192xf32> to vector<8x16xf32>
    %15 = vector.extract_strided_slice %10 {offsets = [0, 64], sizes = [8, 16], strides = [1, 1]} : vector<8x192xf32> to vector<8x16xf32>
    %16 = vector.extract_strided_slice %10 {offsets = [0, 128], sizes = [8, 16], strides = [1, 1]} : vector<8x192xf32> to vector<8x16xf32>
    %cst_12 = arith.constant dense<0.000000e+00> : vector<8x8xf32>
    %17 = tpu.matmul %14, %15, %cst_12 {dimension_numbers = #tpu.dot_dimension_numbers<[1], [1], [0], [0], [0, 0, 1, 0], [], []>} : vector<8x16xf32>, vector<8x16xf32>, vector<8x8xf32> -> vector<8x8xf32>
    %cst_13 = arith.constant dense<0xFF800000> : vector<8xf32>
    %18 = vector.multi_reduction <maximumf>, %17, %cst_13 [1] : vector<8x8xf32> to vector<8xf32>
    %19 = vector.shape_cast %18 : vector<8xf32> to vector<8x1xf32>
    %20 = vector.broadcast %19 : vector<8x1xf32> to vector<8x8xf32>
    %21 = arith.subf %17, %20 : vector<8x8xf32>
    %22 = math.exp %21 : vector<8x8xf32>
    %cst_14 = arith.constant dense<0.000000e+00> : vector<8xf32>
    %23 = vector.multi_reduction <add>, %22, %cst_14 [1] : vector<8x8xf32> to vector<8xf32>
    %24 = vector.shape_cast %23 : vector<8xf32> to vector<8x1xf32>
    %25 = vector.broadcast %24 : vector<8x1xf32> to vector<8x8xf32>
    %26 = arith.divf %22, %25 : vector<8x8xf32>
    %cst_15 = arith.constant dense<0.000000e+00> : vector<8x16xf32>
    %27 = tpu.matmul %26, %16, %cst_15 {dimension_numbers = #tpu.dot_dimension_numbers<[1], [0], [0], [1], [0, 0, 1, 1], [], []>} : vector<8x8xf32>, vector<8x16xf32>, vector<8x16xf32> -> vector<8x16xf32>
    %28 = vector.extract_strided_slice %12 {offsets = [0, 0], sizes = [16, 64], strides = [1, 1]} : vector<64x64xf32> to vector<16x64xf32>
    %cst_16 = arith.constant dense<0.000000e+00> : vector<8x64xf32>
    %29 = tpu.matmul %27, %28, %cst_16 {dimension_numbers = #tpu.dot_dimension_numbers<[1], [0], [0], [1], [0, 0, 1, 1], [], []>} : vector<8x16xf32>, vector<16x64xf32>, vector<8x64xf32> -> vector<8x64xf32>
    %30 = arith.addf %13, %29 : vector<8x64xf32>
    %31 = vector.extract_strided_slice %10 {offsets = [0, 16], sizes = [8, 16], strides = [1, 1]} : vector<8x192xf32> to vector<8x16xf32>
    %32 = vector.extract_strided_slice %10 {offsets = [0, 80], sizes = [8, 16], strides = [1, 1]} : vector<8x192xf32> to vector<8x16xf32>
    %33 = vector.extract_strided_slice %10 {offsets = [0, 144], sizes = [8, 16], strides = [1, 1]} : vector<8x192xf32> to vector<8x16xf32>
    %cst_17 = arith.constant dense<0.000000e+00> : vector<8x8xf32>
    %34 = tpu.matmul %31, %32, %cst_17 {dimension_numbers = #tpu.dot_dimension_numbers<[1], [1], [0], [0], [0, 0, 1, 0], [], []>} : vector<8x16xf32>, vector<8x16xf32>, vector<8x8xf32> -> vector<8x8xf32>
    %cst_18 = arith.constant dense<0xFF800000> : vector<8xf32>
    %35 = vector.multi_reduction <maximumf>, %34, %cst_18 [1] : vector<8x8xf32> to vector<8xf32>
    %36 = vector.shape_cast %35 : vector<8xf32> to vector<8x1xf32>
    %37 = vector.broadcast %36 : vector<8x1xf32> to vector<8x8xf32>
    %38 = arith.subf %34, %37 : vector<8x8xf32>
    %39 = math.exp %38 : vector<8x8xf32>
    %cst_19 = arith.constant dense<0.000000e+00> : vector<8xf32>
    %40 = vector.multi_reduction <add>, %39, %cst_19 [1] : vector<8x8xf32> to vector<8xf32>
    %41 = vector.shape_cast %40 : vector<8xf32> to vector<8x1xf32>
    %42 = vector.broadcast %41 : vector<8x1xf32> to vector<8x8xf32>
    %43 = arith.divf %39, %42 : vector<8x8xf32>
    %cst_20 = arith.constant dense<0.000000e+00> : vector<8x16xf32>
    %44 = tpu.matmul %43, %33, %cst_20 {dimension_numbers = #tpu.dot_dimension_numbers<[1], [0], [0], [1], [0, 0, 1, 1], [], []>} : vector<8x8xf32>, vector<8x16xf32>, vector<8x16xf32> -> vector<8x16xf32>
    %45 = vector.extract_strided_slice %12 {offsets = [16, 0], sizes = [16, 64], strides = [1, 1]} : vector<64x64xf32> to vector<16x64xf32>
    %cst_21 = arith.constant dense<0.000000e+00> : vector<8x64xf32>
    %46 = tpu.matmul %44, %45, %cst_21 {dimension_numbers = #tpu.dot_dimension_numbers<[1], [0], [0], [1], [0, 0, 1, 1], [], []>} : vector<8x16xf32>, vector<16x64xf32>, vector<8x64xf32> -> vector<8x64xf32>
    %47 = arith.addf %30, %46 : vector<8x64xf32>
    %48 = vector.extract_strided_slice %10 {offsets = [0, 32], sizes = [8, 16], strides = [1, 1]} : vector<8x192xf32> to vector<8x16xf32>
    %49 = vector.extract_strided_slice %10 {offsets = [0, 96], sizes = [8, 16], strides = [1, 1]} : vector<8x192xf32> to vector<8x16xf32>
    %50 = vector.extract_strided_slice %10 {offsets = [0, 160], sizes = [8, 16], strides = [1, 1]} : vector<8x192xf32> to vector<8x16xf32>
    %cst_22 = arith.constant dense<0.000000e+00> : vector<8x8xf32>
    %51 = tpu.matmul %48, %49, %cst_22 {dimension_numbers = #tpu.dot_dimension_numbers<[1], [1], [0], [0], [0, 0, 1, 0], [], []>} : vector<8x16xf32>, vector<8x16xf32>, vector<8x8xf32> -> vector<8x8xf32>
    %cst_23 = arith.constant dense<0xFF800000> : vector<8xf32>
    %52 = vector.multi_reduction <maximumf>, %51, %cst_23 [1] : vector<8x8xf32> to vector<8xf32>
    %53 = vector.shape_cast %52 : vector<8xf32> to vector<8x1xf32>
    %54 = vector.broadcast %53 : vector<8x1xf32> to vector<8x8xf32>
    %55 = arith.subf %51, %54 : vector<8x8xf32>
    %56 = math.exp %55 : vector<8x8xf32>
    %cst_24 = arith.constant dense<0.000000e+00> : vector<8xf32>
    %57 = vector.multi_reduction <add>, %56, %cst_24 [1] : vector<8x8xf32> to vector<8xf32>
    %58 = vector.shape_cast %57 : vector<8xf32> to vector<8x1xf32>
    %59 = vector.broadcast %58 : vector<8x1xf32> to vector<8x8xf32>
    %60 = arith.divf %56, %59 : vector<8x8xf32>
    %cst_25 = arith.constant dense<0.000000e+00> : vector<8x16xf32>
    %61 = tpu.matmul %60, %50, %cst_25 {dimension_numbers = #tpu.dot_dimension_numbers<[1], [0], [0], [1], [0, 0, 1, 1], [], []>} : vector<8x8xf32>, vector<8x16xf32>, vector<8x16xf32> -> vector<8x16xf32>
    %62 = vector.extract_strided_slice %12 {offsets = [32, 0], sizes = [16, 64], strides = [1, 1]} : vector<64x64xf32> to vector<16x64xf32>
    %cst_26 = arith.constant dense<0.000000e+00> : vector<8x64xf32>
    %63 = tpu.matmul %61, %62, %cst_26 {dimension_numbers = #tpu.dot_dimension_numbers<[1], [0], [0], [1], [0, 0, 1, 1], [], []>} : vector<8x16xf32>, vector<16x64xf32>, vector<8x64xf32> -> vector<8x64xf32>
    %64 = arith.addf %47, %63 : vector<8x64xf32>
    %65 = vector.extract_strided_slice %10 {offsets = [0, 48], sizes = [8, 16], strides = [1, 1]} : vector<8x192xf32> to vector<8x16xf32>
    %66 = vector.extract_strided_slice %10 {offsets = [0, 112], sizes = [8, 16], strides = [1, 1]} : vector<8x192xf32> to vector<8x16xf32>
    %67 = vector.extract_strided_slice %10 {offsets = [0, 176], sizes = [8, 16], strides = [1, 1]} : vector<8x192xf32> to vector<8x16xf32>
    %cst_27 = arith.constant dense<0.000000e+00> : vector<8x8xf32>
    %68 = tpu.matmul %65, %66, %cst_27 {dimension_numbers = #tpu.dot_dimension_numbers<[1], [1], [0], [0], [0, 0, 1, 0], [], []>} : vector<8x16xf32>, vector<8x16xf32>, vector<8x8xf32> -> vector<8x8xf32>
    %cst_28 = arith.constant dense<0xFF800000> : vector<8xf32>
    %69 = vector.multi_reduction <maximumf>, %68, %cst_28 [1] : vector<8x8xf32> to vector<8xf32>
    %70 = vector.shape_cast %69 : vector<8xf32> to vector<8x1xf32>
    %71 = vector.broadcast %70 : vector<8x1xf32> to vector<8x8xf32>
    %72 = arith.subf %68, %71 : vector<8x8xf32>
    %73 = math.exp %72 : vector<8x8xf32>
    %cst_29 = arith.constant dense<0.000000e+00> : vector<8xf32>
    %74 = vector.multi_reduction <add>, %73, %cst_29 [1] : vector<8x8xf32> to vector<8xf32>
    %75 = vector.shape_cast %74 : vector<8xf32> to vector<8x1xf32>
    %76 = vector.broadcast %75 : vector<8x1xf32> to vector<8x8xf32>
    %77 = arith.divf %73, %76 : vector<8x8xf32>
    %cst_30 = arith.constant dense<0.000000e+00> : vector<8x16xf32>
    %78 = tpu.matmul %77, %67, %cst_30 {dimension_numbers = #tpu.dot_dimension_numbers<[1], [0], [0], [1], [0, 0, 1, 1], [], []>} : vector<8x8xf32>, vector<8x16xf32>, vector<8x16xf32> -> vector<8x16xf32>
    %79 = vector.extract_strided_slice %12 {offsets = [48, 0], sizes = [16, 64], strides = [1, 1]} : vector<64x64xf32> to vector<16x64xf32>
    %cst_31 = arith.constant dense<0.000000e+00> : vector<8x64xf32>
    %80 = tpu.matmul %78, %79, %cst_31 {dimension_numbers = #tpu.dot_dimension_numbers<[1], [0], [0], [1], [0, 0, 1, 1], [], []>} : vector<8x16xf32>, vector<16x64xf32>, vector<8x64xf32> -> vector<8x64xf32>
    %81 = arith.addf %64, %80 : vector<8x64xf32>
    %c0_32 = arith.constant 0 : index
    %c0_33 = arith.constant 0 : index
    %c0_34 = arith.constant 0 : index
    %82 = vector.load %arg7[%c0_32, %c0_33, %c0_34] : memref<1x1x64xf32, #tpu.memory_space<vmem>>, vector<1x1x64xf32>
    %83 = vector.shape_cast %82 : vector<1x1x64xf32> to vector<1x64xf32>
    %84 = vector.broadcast %83 : vector<1x64xf32> to vector<8x64xf32>
    %85 = arith.addf %81, %84 : vector<8x64xf32>
    %86 = arith.addf %3, %85 : vector<8x64xf32>
    %c0_35 = arith.constant 0 : index
    %c0_36 = arith.constant 0 : index
    %c0_37 = arith.constant 0 : index
    %87 = vector.load %arg8[%c0_35, %c0_36, %c0_37] : memref<1x1x64xf32, #tpu.memory_space<vmem>>, vector<1x1x64xf32>
    %88 = vector.shape_cast %87 : vector<1x1x64xf32> to vector<1x64xf32>
    %c0_38 = arith.constant 0 : index
    %c0_39 = arith.constant 0 : index
    %c0_40 = arith.constant 0 : index
    %89 = vector.load %arg9[%c0_38, %c0_39, %c0_40] : memref<1x1x64xf32, #tpu.memory_space<vmem>>, vector<1x1x64xf32>
    %90 = vector.shape_cast %89 : vector<1x1x64xf32> to vector<1x64xf32>
    %cst_41 = arith.constant dense<0.000000e+00> : vector<8xf32>
    %91 = vector.multi_reduction <add>, %86, %cst_41 [1] : vector<8x64xf32> to vector<8xf32>
    %92 = vector.shape_cast %91 : vector<8xf32> to vector<8x1xf32>
    %cst_42 = arith.constant 6.400000e+01 : f32
    %93 = vector.broadcast %cst_42 : f32 to vector<8x1xf32>
    %94 = arith.divf %92, %93 : vector<8x1xf32>
    %95 = vector.broadcast %94 : vector<8x1xf32> to vector<8x64xf32>
    %96 = arith.subf %86, %95 : vector<8x64xf32>
    %97 = arith.mulf %96, %96 : vector<8x64xf32>
    %cst_43 = arith.constant dense<0.000000e+00> : vector<8xf32>
    %98 = vector.multi_reduction <add>, %97, %cst_43 [1] : vector<8x64xf32> to vector<8xf32>
    %99 = vector.shape_cast %98 : vector<8xf32> to vector<8x1xf32>
    %cst_44 = arith.constant 6.400000e+01 : f32
    %100 = vector.broadcast %cst_44 : f32 to vector<8x1xf32>
    %101 = arith.divf %99, %100 : vector<8x1xf32>
    %cst_45 = arith.constant 9.99999974E-6 : f32
    %102 = vector.broadcast %cst_45 : f32 to vector<8x1xf32>
    %103 = arith.addf %101, %102 : vector<8x1xf32>
    %104 = math.rsqrt %103 : vector<8x1xf32>
    %105 = vector.broadcast %104 : vector<8x1xf32> to vector<8x64xf32>
    %106 = arith.mulf %96, %105 : vector<8x64xf32>
    %107 = vector.broadcast %88 : vector<1x64xf32> to vector<8x64xf32>
    %108 = arith.mulf %106, %107 : vector<8x64xf32>
    %109 = vector.broadcast %90 : vector<1x64xf32> to vector<8x64xf32>
    %110 = arith.addf %108, %109 : vector<8x64xf32>
    %c0_46 = arith.constant 0 : index
    %c0_47 = arith.constant 0 : index
    %c0_48 = arith.constant 0 : index
    %111 = vector.load %arg10[%c0_46, %c0_47, %c0_48] : memref<1x64x2048xf32, #tpu.memory_space<vmem>>, vector<1x64x2048xf32>
    %112 = vector.shape_cast %111 : vector<1x64x2048xf32> to vector<64x2048xf32>
    %cst_49 = arith.constant dense<0.000000e+00> : vector<8x2048xf32>
    %113 = tpu.matmul %110, %112, %cst_49 {dimension_numbers = #tpu.dot_dimension_numbers<[1], [0], [0], [1], [0, 0, 1, 1], [], []>} : vector<8x64xf32>, vector<64x2048xf32>, vector<8x2048xf32> -> vector<8x2048xf32>
    %c0_50 = arith.constant 0 : index
    %c0_51 = arith.constant 0 : index
    %c0_52 = arith.constant 0 : index
    %114 = vector.load %arg11[%c0_50, %c0_51, %c0_52] : memref<1x1x2048xf32, #tpu.memory_space<vmem>>, vector<1x1x2048xf32>
    %115 = vector.shape_cast %114 : vector<1x1x2048xf32> to vector<1x2048xf32>
    %116 = vector.broadcast %115 : vector<1x2048xf32> to vector<8x2048xf32>
    %117 = arith.addf %113, %116 : vector<8x2048xf32>
    %cst_53 = arith.constant 0.000000e+00 : f32
    %118 = vector.broadcast %cst_53 : f32 to vector<8x2048xf32>
    %119 = arith.maximumf %117, %118 : vector<8x2048xf32>
    %c0_54 = arith.constant 0 : index
    %c0_55 = arith.constant 0 : index
    %c0_56 = arith.constant 0 : index
    %120 = vector.load %arg12[%c0_54, %c0_55, %c0_56] : memref<1x2048x64xf32, #tpu.memory_space<vmem>>, vector<1x2048x64xf32>
    %121 = vector.shape_cast %120 : vector<1x2048x64xf32> to vector<2048x64xf32>
    %cst_57 = arith.constant dense<0.000000e+00> : vector<8x64xf32>
    %122 = tpu.matmul %119, %121, %cst_57 {dimension_numbers = #tpu.dot_dimension_numbers<[1], [0], [0], [1], [0, 0, 1, 1], [], []>} : vector<8x2048xf32>, vector<2048x64xf32>, vector<8x64xf32> -> vector<8x64xf32>
    %c0_58 = arith.constant 0 : index
    %c0_59 = arith.constant 0 : index
    %c0_60 = arith.constant 0 : index
    %123 = vector.load %arg13[%c0_58, %c0_59, %c0_60] : memref<1x1x64xf32, #tpu.memory_space<vmem>>, vector<1x1x64xf32>
    %124 = vector.shape_cast %123 : vector<1x1x64xf32> to vector<1x64xf32>
    %125 = vector.broadcast %124 : vector<1x64xf32> to vector<8x64xf32>
    %126 = arith.addf %122, %125 : vector<8x64xf32>
    %127 = arith.addf %110, %126 : vector<8x64xf32>
    %c0_61 = arith.constant 0 : index
    %c0_62 = arith.constant 0 : index
    %c0_63 = arith.constant 0 : index
    %128 = vector.load %arg14[%c0_61, %c0_62, %c0_63] : memref<1x1x64xf32, #tpu.memory_space<vmem>>, vector<1x1x64xf32>
    %129 = vector.shape_cast %128 : vector<1x1x64xf32> to vector<1x64xf32>
    %c0_64 = arith.constant 0 : index
    %c0_65 = arith.constant 0 : index
    %c0_66 = arith.constant 0 : index
    %130 = vector.load %arg15[%c0_64, %c0_65, %c0_66] : memref<1x1x64xf32, #tpu.memory_space<vmem>>, vector<1x1x64xf32>
    %131 = vector.shape_cast %130 : vector<1x1x64xf32> to vector<1x64xf32>
    %cst_67 = arith.constant dense<0.000000e+00> : vector<8xf32>
    %132 = vector.multi_reduction <add>, %127, %cst_67 [1] : vector<8x64xf32> to vector<8xf32>
    %133 = vector.shape_cast %132 : vector<8xf32> to vector<8x1xf32>
    %cst_68 = arith.constant 6.400000e+01 : f32
    %134 = vector.broadcast %cst_68 : f32 to vector<8x1xf32>
    %135 = arith.divf %133, %134 : vector<8x1xf32>
    %136 = vector.broadcast %135 : vector<8x1xf32> to vector<8x64xf32>
    %137 = arith.subf %127, %136 : vector<8x64xf32>
    %138 = arith.mulf %137, %137 : vector<8x64xf32>
    %cst_69 = arith.constant dense<0.000000e+00> : vector<8xf32>
    %139 = vector.multi_reduction <add>, %138, %cst_69 [1] : vector<8x64xf32> to vector<8xf32>
    %140 = vector.shape_cast %139 : vector<8xf32> to vector<8x1xf32>
    %cst_70 = arith.constant 6.400000e+01 : f32
    %141 = vector.broadcast %cst_70 : f32 to vector<8x1xf32>
    %142 = arith.divf %140, %141 : vector<8x1xf32>
    %cst_71 = arith.constant 9.99999974E-6 : f32
    %143 = vector.broadcast %cst_71 : f32 to vector<8x1xf32>
    %144 = arith.addf %142, %143 : vector<8x1xf32>
    %145 = math.rsqrt %144 : vector<8x1xf32>
    %146 = vector.broadcast %145 : vector<8x1xf32> to vector<8x64xf32>
    %147 = arith.mulf %137, %146 : vector<8x64xf32>
    %148 = vector.broadcast %129 : vector<1x64xf32> to vector<8x64xf32>
    %149 = arith.mulf %147, %148 : vector<8x64xf32>
    %150 = vector.broadcast %131 : vector<1x64xf32> to vector<8x64xf32>
    %151 = arith.addf %149, %150 : vector<8x64xf32>
    %c0_72 = arith.constant 0 : index
    %c0_73 = arith.constant 0 : index
    %152 = vector.load %arg19[%c0_72, %c0_73] : memref<8x64xf32, #tpu.memory_space<vmem>>, vector<8x64xf32>
    tpu.vector_store %arg19[%c0_72, %c0_73], %151 {strides = array<i32>} : memref<8x64xf32, #tpu.memory_space<vmem>>, vector<8x64xf32>,
    %c1_i32 = arith.constant 1 : i32
    %153 = arith.cmpi eq, %arg0, %c1_i32 : i32
    %154 = arith.extui %153 : i1 to i32
    %c0_i32_74 = arith.constant 0 : i32
    %155 = arith.cmpi ne, %154, %c0_i32_74 : i32
    scf.if %155 {
      %c0_75 = arith.constant 0 : index
      %c0_76 = arith.constant 0 : index
      %156 = vector.load %arg16[%c0_75, %c0_76] : memref<64x128xf32, #tpu.memory_space<vmem>>, vector<64x128xf32>
      %cst_77 = arith.constant dense<0.000000e+00> : vector<8x128xf32>
      %157 = tpu.matmul %151, %156, %cst_77 {dimension_numbers = #tpu.dot_dimension_numbers<[1], [0], [0], [1], [0, 0, 1, 1], [], []>} : vector<8x64xf32>, vector<64x128xf32>, vector<8x128xf32> -> vector<8x128xf32>
      %c0_78 = arith.constant 0 : index
      %c0_79 = arith.constant 0 : index
      %158 = vector.load %arg17[%c0_78, %c0_79] : memref<1x128xf32, #tpu.memory_space<vmem>>, vector<1x128xf32>
      %159 = vector.broadcast %158 : vector<1x128xf32> to vector<8x128xf32>
      %160 = arith.addf %157, %159 : vector<8x128xf32>
      %c0_80 = arith.constant 0 : index
      %c0_81 = arith.constant 0 : index
      %161 = vector.load %arg18[%c0_80, %c0_81] : memref<8x128xf32, #tpu.memory_space<vmem>>, vector<8x128xf32>
      tpu.vector_store %arg18[%c0_80, %c0_81], %160 {strides = array<i32>} : memref<8x128xf32, #tpu.memory_space<vmem>>, vector<8x128xf32>,
    } else {
    }
    return
  }
  func.func @transform_0(%arg0: i32) -> (i32, i32) {
    %c0_i32 = arith.constant 0 : i32
    %c0_i32_0 = arith.constant 0 : i32
    %c0_i32_1 = arith.constant 0 : i32
    return %c0_i32, %c0_i32_0 : i32, i32
  }
  func.func @transform_1(%arg0: i32) -> (i32, i32) {
    %c0_i32 = arith.constant 0 : i32
    %c0_i32_0 = arith.constant 0 : i32
    %c0_i32_1 = arith.constant 0 : i32
    return %c0_i32, %c0_i32_0 : i32, i32
  }
  func.func @transform_2(%arg0: i32) -> (i32, i32) {
    %c0_i32 = arith.constant 0 : i32
    %c0_i32_0 = arith.constant 0 : i32
    %c0_i32_1 = arith.constant 0 : i32
    return %c0_i32, %c0_i32_0 : i32, i32
  }
  func.func @transform_3(%arg0: i32) -> (i32, i32, i32) {
    %c0_i32 = arith.constant 0 : i32
    %c0_i32_0 = arith.constant 0 : i32
    %c0_i32_1 = arith.constant 0 : i32
    return %arg0, %c0_i32, %c0_i32_0 : i32, i32, i32
  }
  func.func @transform_4(%arg0: i32) -> (i32, i32, i32) {
    %c0_i32 = arith.constant 0 : i32
    %c0_i32_0 = arith.constant 0 : i32
    %c0_i32_1 = arith.constant 0 : i32
    return %arg0, %c0_i32, %c0_i32_0 : i32, i32, i32
  }
  func.func @transform_5(%arg0: i32) -> (i32, i32, i32) {
    %c0_i32 = arith.constant 0 : i32
    %c0_i32_0 = arith.constant 0 : i32
    %c0_i32_1 = arith.constant 0 : i32
    return %arg0, %c0_i32, %c0_i32_0 : i32, i32, i32
  }
  func.func @transform_6(%arg0: i32) -> (i32, i32, i32) {
    %c0_i32 = arith.constant 0 : i32
    %c0_i32_0 = arith.constant 0 : i32
    %c0_i32_1 = arith.constant 0 : i32
    return %arg0, %c0_i32, %c0_i32_0 : i32, i32, i32
  }
  func.func @transform_7(%arg0: i32) -> (i32, i32, i32) {
    %c0_i32 = arith.constant 0 : i32
    %c0_i32_0 = arith.constant 0 : i32
    %c0_i32_1 = arith.constant 0 : i32
    return %arg0, %c0_i32, %c0_i32_0 : i32, i32, i32
  }
  func.func @transform_8(%arg0: i32) -> (i32, i32, i32) {
    %c0_i32 = arith.constant 0 : i32
    %c0_i32_0 = arith.constant 0 : i32
    %c0_i32_1 = arith.constant 0 : i32
    return %arg0, %c0_i32, %c0_i32_0 : i32, i32, i32
  }
  func.func @transform_9(%arg0: i32) -> (i32, i32, i32) {
    %c0_i32 = arith.constant 0 : i32
    %c0_i32_0 = arith.constant 0 : i32
    %c0_i32_1 = arith.constant 0 : i32
    return %arg0, %c0_i32, %c0_i32_0 : i32, i32, i32
  }
  func.func @transform_10(%arg0: i32) -> (i32, i32, i32) {
    %c0_i32 = arith.constant 0 : i32
    %c0_i32_0 = arith.constant 0 : i32
    %c0_i32_1 = arith.constant 0 : i32
    return %arg0, %c0_i32, %c0_i32_0 : i32, i32, i32
  }
  func.func @transform_11(%arg0: i32) -> (i32, i32, i32) {
    %c0_i32 = arith.constant 0 : i32
    %c0_i32_0 = arith.constant 0 : i32
    %c0_i32_1 = arith.constant 0 : i32
    return %arg0, %c0_i32, %c0_i32_0 : i32, i32, i32
  }
  func.func @transform_12(%arg0: i32) -> (i32, i32, i32) {
    %c0_i32 = arith.constant 0 : i32
    %c0_i32_0 = arith.constant 0 : i32
    %c0_i32_1 = arith.constant 0 : i32
    return %arg0, %c0_i32, %c0_i32_0 : i32, i32, i32
  }
  func.func @transform_13(%arg0: i32) -> (i32, i32, i32) {
    %c0_i32 = arith.constant 0 : i32
    %c0_i32_0 = arith.constant 0 : i32
    %c0_i32_1 = arith.constant 0 : i32
    return %arg0, %c0_i32, %c0_i32_0 : i32, i32, i32
  }
  func.func @transform_14(%arg0: i32) -> (i32, i32, i32) {
    %c0_i32 = arith.constant 0 : i32
    %c0_i32_0 = arith.constant 0 : i32
    %c0_i32_1 = arith.constant 0 : i32
    return %arg0, %c0_i32, %c0_i32_0 : i32, i32, i32
  }
  func.func @transform_15(%arg0: i32) -> (i32, i32) {
    %c0_i32 = arith.constant 0 : i32
    %c0_i32_0 = arith.constant 0 : i32
    %c0_i32_1 = arith.constant 0 : i32
    return %c0_i32, %c0_i32_0 : i32, i32
  }
  func.func @transform_16(%arg0: i32) -> (i32, i32) {
    %c0_i32 = arith.constant 0 : i32
    %c0_i32_0 = arith.constant 0 : i32
    %c0_i32_1 = arith.constant 0 : i32
    return %c0_i32, %c0_i32_0 : i32, i32
  }
  func.func @transform_17(%arg0: i32) -> (i32, i32) {
    %c0_i32 = arith.constant 0 : i32
    %c0_i32_0 = arith.constant 0 : i32
    %c0_i32_1 = arith.constant 0 : i32
    return %c0_i32, %c0_i32_0 : i32, i32
  }
}

</mosaic_0001>

<bundles_post_ra>
// kernel: transformer_forward.1
= control target key start
LH: loop header
LB: loop body
LE: loop exit
PB: predicated region body
PF: predicated region fallthrough
CT: control target
= control target key end

     0   :  { %s3537_s0 = inlined_call_operand.vmem [shape: f32[8,16], index: 0, kind: input, shape index: {}]   ;;  %s3538_s1 = inlined_call_operand.vmem [shape: f32[16,64], index: 1, kind: input, shape index: {}]   ;;  %s3539_s2 = inlined_call_operand.vmem [shape: f32[1,64], index: 2, kind: input, shape index: {}]   ;;  %s3540_s3 = inlined_call_operand.vmem [shape: f32[2,64,192], index: 3, kind: input, shape index: {}]   ;;  %s3541_s4 = inlined_call_operand.vmem [shape: f32[2,1,192], index: 4, kind: input, shape index: {}]   ;;  %s3542_s5 = inlined_call_operand.vmem [shape: f32[2,64,64], index: 5, kind: input, shape index: {}]   ;;  %s3543_s6 = inlined_call_operand.vmem [shape: f32[2,1,64], index: 6, kind: input, shape index: {}]   ;;  %s3544_s7 = inlined_call_operand.vmem [shape: f32[2,1,64], index: 7, kind: input, shape index: {}]   ;;  %s3545_s8 = inlined_call_operand.vmem [shape: f32[2,1,64], index: 8, kind: input, shape index: {}]   ;;  %s3546_s9 = inlined_call_operand.vmem [shape: f32[2,64,2048], index: 9, kind: input, shape index: {}]   ;;  %s3547_s10 = inlined_call_operand.vmem [shape: f32[2,1,2048], index: 10, kind: input, shape index: {}]   ;;  %s3548_s11 = inlined_call_operand.vmem [shape: f32[2,2048,64], index: 11, kind: input, shape index: {}]   ;;  %s3549_s12 = inlined_call_operand.vmem [shape: f32[2,1,64], index: 12, kind: input, shape index: {}]   ;;  %s3550_s13 = inlined_call_operand.vmem [shape: f32[2,1,64], index: 13, kind: input, shape index: {}]   ;;  %s3551_s14 = inlined_call_operand.vmem [shape: f32[2,1,64], index: 14, kind: input, shape index: {}]   ;;  %s3552_s15 = inlined_call_operand.vmem [shape: f32[64,128], index: 15, kind: input, shape index: {}]   ;;  %s3553_s16 = inlined_call_operand.vmem [shape: f32[1,128], index: 16, kind: input, shape index: {}]   ;;  %s3554_s17 = inlined_call_operand.hbm [shape: f32[8,128], index: 17, kind: output, shape index: {}]  }
   0x1   :  { %3558 = sst [smem:[#allocation8_spill]] %s3537_s0 }
   0x2   :  { %3559 = sst [smem:[#allocation9_spill]] %s3538_s1 }
   0x3   :  { %3560 = sst [smem:[#allocation10_spill]] %s3540_s3 }
   0x4   :  { %3561 = sst [smem:[#allocation11_spill]] %s3541_s4 }
   0x5   :  { %3562 = sst [smem:[#allocation12_spill]] %s3542_s5 }
   0x6   :  { %3563 = sst [smem:[#allocation13_spill]] %s3552_s15 }
   0x7   :  { %3564 = sst [smem:[#allocation14_spill]] %s3553_s16 }
   0x8   :  { %3565 = sst [smem:[#allocation15_spill]] %s3554_s17 }
   0x9   :  { %22 = vsyncpa [#allocation4], 0  ;;  %s2846_s24 = smov 0  }
   0xa LB: > { %3566 = sst [smem:[#allocation6_spill]] %s2745_s24  ;;  %s2852_s25 = sadd.s32 4294967295, %s2745_s24   ;;  %s2745_s24 = sphi %s2846_s24, %s28_s24  }
   0xb   : > { %p2597_p0 = scmp.ge.s32.totalorder %s2745_s24, 1  ;;  %p579_p1 = scmp.lt.s32.totalorder %s2745_s24, 3 }
   0xd   : > { %p580_p2 = pnand %p2597_p0, %p579_p1 }
   0xf   : > { %583 = sbr.rel (%p580_p2) target bundleno = 2945 (0xb81), region = 88 }
  0x14   : > { %p667_p3 = scmp.lt.s32.totalorder %s2852_s25, 1  ;;  %s3567_s3 = sld [smem:[#allocation10_spill]] }
  0x15   : > { %s3568_s4 = sld [smem:[#allocation11_spill]]  ;;  %p2608_p4 = scmp.ne.s32.totalorder %s2852_s25, 0 }
  0x16   : > { %s2858_s26 = scalar_select %p667_p3, %s2852_s25, 1 }
  0x17   : > { %s3570_s5 = sld [smem:[#allocation12_spill]] }
  0x18   : > { %s2650_s27 = sshll.u32 %s2858_s26, 7  ;;  %s2600_s28 = sshll.u32 %s2858_s26, 1 }
  0x19   : > { %s2651_s20 = sshll.u32 %s2858_s26, 6  ;;  %s2605_s21 = sshll.u32 %s2858_s26, 4 }
  0x1a   : > { %s2865_s30 = scalar_lea.vmem %s3567_s3, %s2650_s27  ;;  %s2900_s17 = scalar_lea.vmem %s3547_s10, %s2605_s21 }
  0x1b   : > { %s2870_s1 = scalar_lea.vmem %s3568_s4, %s2600_s28  ;;  %s2652_s28 = sshll.u32 %s2858_s26, 10 }
  0x1c   : > { %3569 = sst [smem:[#allocation7_spill]] %s2870_s1  ;;  %s2894_s1 = scalar_lea.vmem %s3546_s9, %s2652_s28 }
  0x1d   : > { %s2880_s16 = scalar_lea.vmem %s3570_s5, %s2651_s20  ;;  %s2653_s24 = sshll.u32 %s2858_s26, 11 }
  0x1e   : > { %s2906_s29 = scalar_lea.vmem %s3548_s11, %s2653_s24  ;;  %s706_s18 = scalar_lea.vmem %s3549_s12, %s2858_s26 }
  0x1f   : > { %s709_s28 = scalar_lea.vmem %s3550_s13, %s2858_s26  ;;  %s712_s23 = scalar_lea.vmem %s3551_s14, %s2858_s26 }
  0x20   : > { %716 = sbr.rel (%p2608_p4) target bundleno = 171 (0xab), region = 92  ;;  %s3571_s20 = sld [smem:[#allocation9_spill]] (!%p2608_p4) }
  0x21   : > { %s3572_s27 = sld [smem:[#allocation8_spill]] (!%p2608_p4) }
  0x25   : > { %vm724_vm0 = vcmask 130048   ;;  %v2677_v3 = vld [vmem:[%s3539_s2] ss:$0 sm:$0xff]  ;;  %vm748_vm1 = vcmask 523264  }
  0x26   : > { %v718_v0 = vld [vmem:[%s3571_s20 + $0x8] sm:$0xff]  ;;  %v717_v1 = vld [vmem:[%s3571_s20] sm:$0xff] }
  0x27   : > { %742 = vmatpush.msra.mxu0 %v718_v0  ;;  %v719_v2 = vld [vmem:[%s3572_s27] sm:$0xff] }
  0x29   : > { %743 = vmatpush.msra.mxu0 %v717_v1 }
  0x2a   : > { %2609 = vmatmul.msk.f32.vlgmr.msra.gmra.mxu0 %vm724_vm0, %v719_v2 }
  0xa7   : > { %v745_v4 = vpop.f32.mrf.mxu0 }
  0xa8   : > { %v746_v5 = vadd.f32 %v2677_v3, %v745_v4 }
  0xaa   : > { %749 = vst.msk [vmem:[#allocation2] sm:$0xff] %vm748_vm1, %v746_v5 }
  0xab PF: > { %v765_v6 = vld [vmem:[%s2865_s30 + $0x70] sm:$0xff]  ;;  %v763_v7 = vld [vmem:[%s2865_s30 + $0x60] sm:$0xff]  ;;  %s3573_s19 = sld [smem:[#allocation7_spill]]  ;;  %vm773_vm2 = vcmask 523264   ;;  %s2747_s21 = smov 112   ;;  %vm828_vm3 = vcmask 130048  }
  0xac   : > { %785 = vmatpush.msra.mxu0 %v765_v6  ;;  %v761_v8 = vld [vmem:[%s2865_s30 + $0x50] sm:$0xff]  ;;  %v759_v9 = vld [vmem:[%s2865_s30 + $0x40] sm:$0xff]  ;;  %s2748_s22 = smov 64   ;;  %vm853_vm4 = vcmask 64512   ;;  %s2749_s24 = smov 32   ;;  %v766_v22 = vld [vmem:[%s2865_s30 + $0x78] sm:$0xff] }
  0xad   : > { %v757_v10 = vld [vmem:[%s2865_s30 + $0x30] sm:$0xff]  ;;  %v755_v11 = vld [vmem:[%s2865_s30 + $0x20] sm:$0xff]  ;;  %s2750_s15 = smov 16   ;;  %805 = vmatpush.msra.mxu1 %v766_v22  ;;  %v764_v23 = vld [vmem:[%s2865_s30 + $0x68] sm:$0xff]  ;;  %s2751_s3 = smov 48  }
  0xae   : > { %786 = vmatpush.msra.mxu0 %v763_v7  ;;  %v753_v12 = vld [vmem:[%s2865_s30 + $0x10] sm:$0xff]  ;;  %v751_v13 = vld [vmem:[%s2865_s30] sm:$0xff]  ;;  %v762_v24 = vld [vmem:[%s2865_s30 + $0x58] sm:$0xff]  ;;  %s2753_s0 = smov 80   ;;  %s3574_s4 = scalar_lea.vmem %s3543_s6, %s2858_s26 }
  0xaf   : > { %806 = vmatpush.msra.mxu1 %v764_v23  ;;  %v760_v25 = vld [vmem:[%s2865_s30 + $0x48] sm:$0xff]  ;;  %v758_v26 = vld [vmem:[%s2865_s30 + $0x38] sm:$0xff]  ;;  %v817_v0 = vld [vmem:[%s2880_s16] sm:$0xff]  ;;  %p2644_p5 = scmp.ne.s32.totalorder %s2852_s25, 1 }
  0xb0   : > { %787 = vmatpush.msra.mxu0 %v761_v8  ;;  %v756_v27 = vld [vmem:[%s2865_s30 + $0x28] sm:$0xff]  ;;  %v754_v28 = vld [vmem:[%s2865_s30 + $0x18] sm:$0xff]  ;;  %s3577_s5 = sld [smem:[#allocation13_spill]] (!%p2644_p5) }
  0xb1   : > { %v2941_v14 = vld [vmem:[#allocation2] sm:$0xff]  ;;  %807 = vmatpush.msra.mxu1 %v762_v24  ;;  %v752_v29 = vld [vmem:[%s2865_s30 + $0x8] sm:$0xff]  ;;  %s2752_s30 = smov 96  }
  0xb2   : > { %788 = vmatpush.msra.mxu0 %v759_v9  ;;  %v767_v15 = vld [vmem:[%s3573_s19] sm:$0x3]  ;;  %v818_v63 = vld [vmem:[%s2880_s16 + $0x8] sm:$0xff] }
  0xb3   : > { %v769_v16 = vperm.slane %v767_v15, 0  ;;  %808 = vmatpush.msra.mxu1 %v760_v25  ;;  %v770_v36 = vperm.slane %v767_v15, 1 }
  0xb4   : > { %789 = vmatpush.msra.mxu0 %v757_v10 }
  0xb5   : > { %809 = vmatpush.msra.mxu1 %v758_v26 }
  0xb6   : > { %790 = vmatpush.msra.mxu0 %v755_v11 }
  0xb7   : > { %810 = vmatpush.msra.mxu1 %v756_v27 }
  0xb8   : > { %791 = vmatpush.msra.mxu0 %v753_v12 }
  0xb9   : > { %811 = vmatpush.msra.mxu1 %v754_v28 }
  0xba   : > { %792 = vmatpush.msra.mxu0 %v751_v13 }
  0xbb   : > { %2610 = vmatmul.msk.f32.vlgmr.msra.gmra.mxu0 %vm773_vm2, %v2941_v14  ;;  %812 = vmatpush.msra.mxu1 %v752_v29 }
  0xbc   : > { %2611 = vmatmul.msk.f32.vlgmr.msra.gmra.mxu1 %vm773_vm2, %v2941_v14 }
 0x138   : > { %v794_v17 = vpop.f32.mrf.mxu0 }
 0x139   : > { %v2946_v18 = vadd.f32 %v794_v17, %v769_v16  ;;  %v814_v37 = vpop.f32.mrf.mxu1 }
 0x13a   : > { %v2970_v38 = vadd.f32 %v814_v37, %v770_v36 }
 0x13b   : > { %901 = vrot.lane.b32.xlu2 %v2946_v18, %s2747_s21  ;;  %826 = vrot.lane.b32.xlu0 %v2946_v18, %s2748_s22 }
 0x13c   : > { %896 = vmatpush.msra.mxu3 %v2970_v38 }
 0x195   : > { %v902_v52 = vpop.permute.xlu2 %901 }
 0x1ad   : > { %v827_v19 = vpop.permute.xlu0 %826 }
 0x1ae   : > { %2612 = vmatpush.xpose.msk.msra.mxu2 %vm828_vm3, %v827_v19  ;;  %v819_v19 = vld [vmem:[%s2880_s16 + $0x10] sm:$0xff] }
 0x1b1   : > { %2613 = vmatmul.msk.f32.vlgmr.msra.gmra.mxu2 %vm828_vm3, %v2946_v18 }
 0x234   : > { %v850_v20 = vpop.f32.mrf.mxu2 }
 0x235   : > { %v854_v21 = vsel %vm853_vm4, %v850_v20, -inf }
 0x236   : > { %855 = vmax.xlane.f32.xlu0 %v854_v21 }
 0x24a   : > { %1028 = vrot.lane.b32.xlu0 %v2946_v18, %s2749_s24 }
 0x252   : > { %1130 = vrot.lane.b32.xlu0 %v2946_v18, %s2750_s15  ;;  %s3576_s15 = scalar_lea.vmem %s3545_s8, %s2858_s26 }
 0x2a9   : > { %v856_v30 = vpop.xlane.xlu0 %855 }
 0x2aa   : > { %v857_v31 = vsub.f32 %v850_v20, %v856_v30 }
 0x2ac   : > { %v858_v32 = vmul.f32 1.442695, %v857_v31 }
 0x2ae   : > { %2684 = vpow2.f32 %v858_v32 }
 0x2b4   : > { %v2685_v33 = vpop.eup %2684 }
 0x2b5   : > { %v860_v34 = vsel %vm853_vm4, %v2685_v33, 0.0 }
 0x2b6   : > { %861 = vadd.xlane.f32.xlu1 %v860_v34 }
 0x2bc   : > { %v1029_v35 = vpop.permute.xlu0 %1028 }
 0x2bd   : > { %2620 = vmatpush.xpose.msk.msrb.mxu0 %vm828_vm3, %v1029_v35 }
 0x2c4   : > { %v1131_v16 = vpop.permute.xlu0 %1130 }
 0x2cf   : > { %903 = vrot.lane.b32.xlu1 %v2946_v18, %s2751_s3 }
 0x329   : > { %v862_v39 = vpop.xlane.xlu1 %861 }
 0x32a   : > { %2686 = vrcp.f32 %v862_v39  ;;  %v874_v43 = vand.u32 2147483648, %v862_v39  ;;  %v872_v45 = vand.u32 2147483647, %v862_v39  ;;  %vm868_vm6 = vweird.f32 %v862_v39 }
 0x32c   : > { %v875_v47 = vor.u32 1.1754944e-38, %v874_v43  ;;  %vm873_vm8 = vcmp.eq.f32.partialorder %v872_v45, 8.507059e+37 }
 0x330   : > { %v2687_v40 = vpop.eup %2686 }
 0x331   : > { %v864_v41 = vmul.f32 %v2687_v40, %v862_v39  ;;  %vm869_vm5 = vweird.f32 %v2687_v40 }
 0x332   : > { %vm870_vm7 = vmor %vm868_vm6, %vm869_vm5 }
 0x333   : > { %v865_v42 = vsub.f32 1.0, %v864_v41 }
 0x335   : > { %v866_v44 = vmul.f32 %v2687_v40, %v865_v42 }
 0x337   : > { %v867_v46 = vadd.f32 %v2687_v40, %v866_v44 }
 0x339   : > { %v871_v48 = vsel %vm870_vm7, %v2687_v40, %v867_v46 }
 0x33a   : > { %v876_v49 = vsel %vm873_vm8, %v875_v47, %v871_v48  ;;  %v822_v48 = vld [vmem:[%s2880_s16 + $0x28] sm:$0xff] }
 0x33b   : > { %v877_v50 = vmul.f32 %v2685_v33, %v876_v49  ;;  %v821_v49 = vld [vmem:[%s2880_s16 + $0x20] sm:$0xff] }
 0x33d   : > { %2614 = vmatmul.msk.f32.vlgmr.msra.gmra.mxu3 %vm853_vm4, %v877_v50 }
 0x341   : > { %v904_v51 = vpop.permute.xlu1 %903 }
 0x342   : > { %2615 = vmatpush.xpose.msk.msrb.mxu3 %vm828_vm3, %v904_v51 }
 0x345   : > { %2616 = vmatmul.msk.f32.vlgmr.msrb.gmra.mxu3 %vm828_vm3, %v902_v52 }
 0x3c0   : > { %v898_v53 = vpop.f32.mrf.mxu3 }
 0x3c8   : > { %v926_v54 = vpop.f32.mrf.mxu3 }
 0x3c9   : > { %v929_v55 = vsel %vm853_vm4, %v926_v54, -inf }
 0x3ca   : > { %930 = vmax.xlane.f32.xlu2 %v929_v55 }
 0x3e2   : > { %954 = vrot.lane.b32.xlu2 %v2970_v38, %s2747_s21  ;;  %s3575_s21 = scalar_lea.vmem %s3544_s7, %s2858_s26 }
 0x3ea   : > { %1026 = vrot.lane.b32.xlu2 %v2946_v18, %s2752_s30 }
 0x43d   : > { %v931_v56 = vpop.xlane.xlu2 %930 }
 0x43e   : > { %v932_v57 = vsub.f32 %v926_v54, %v931_v56 }
 0x440   : > { %v933_v58 = vmul.f32 1.442695, %v932_v57 }
 0x442   : > { %2688 = vpow2.f32 %v933_v58 }
 0x445   : > { %v955_v59 = vpop.permute.xlu2 %954 }
 0x446   : > { %975 = vmatpush.msrb.mxu2 %v955_v59 }
 0x448   : > { %v2689_v60 = vpop.eup %2688  ;;  %1020 = vmatpush.msra.mxu2 %v818_v63  ;;  %v824_v63 = vld [vmem:[%s2880_s16 + $0x38] sm:$0xff] }
 0x449   : > { %v935_v61 = vsel %vm853_vm4, %v2689_v60, 0.0 }
 0x44a   : > { %936 = vadd.xlane.f32.xlu1 %v935_v61  ;;  %1021 = vmatpush.msra.mxu2 %v817_v0  ;;  %v823_v0 = vld [vmem:[%s2880_s16 + $0x30] sm:$0xff] }
 0x44d   : > { %v1027_v62 = vpop.permute.xlu2 %1026 }
 0x44e   : > { %2621 = vmatmul.msk.f32.vlgmr.msrb.gmra.mxu0 %vm828_vm3, %v1027_v62 }
 0x463   : > { %1128 = vrot.lane.b32.xlu1 %v2946_v18, %s2753_s0  ;;  %v820_v18 = vld [vmem:[%s2880_s16 + $0x18] sm:$0xff] }
 0x464   : > { %997 = vmatpush.msra.mxu3 %v820_v18 }
 0x466   : > { %998 = vmatpush.msra.mxu3 %v819_v19 }
 0x468   : > { %1121 = vmatpush.msrb.mxu3 %v822_v48  ;;  %v1310_v48 = vld [vmem:[%s2894_s1 + $0x118] sm:$0xff] }
 0x46a   : > { %1122 = vmatpush.msrb.mxu3 %v821_v49  ;;  %v1291_v49 = vld [vmem:[%s2894_s1 + $0x80] sm:$0xff] }
 0x4bd   : > { %v937_v1 = vpop.xlane.xlu1 %936 }
 0x4be   : > { %2690 = vrcp.f32 %v937_v1  ;;  %v949_v5 = vand.u32 2147483648, %v937_v1  ;;  %v947_v7 = vand.u32 2147483647, %v937_v1  ;;  %vm943_vm10 = vweird.f32 %v937_v1 }
 0x4c0   : > { %v950_v10 = vor.u32 1.1754944e-38, %v949_v5  ;;  %vm948_vm12 = vcmp.eq.f32.partialorder %v947_v7, 8.507059e+37 }
 0x4c4   : > { %v2691_v2 = vpop.eup %2690 }
 0x4c5   : > { %v939_v3 = vmul.f32 %v2691_v2, %v937_v1  ;;  %vm944_vm9 = vweird.f32 %v2691_v2 }
 0x4c6   : > { %vm945_vm11 = vmor %vm943_vm10, %vm944_vm9 }
 0x4c7   : > { %v940_v4 = vsub.f32 1.0, %v939_v3 }
 0x4c9   : > { %v941_v6 = vmul.f32 %v2691_v2, %v940_v4 }
 0x4cb   : > { %v942_v8 = vadd.f32 %v2691_v2, %v941_v6  ;;  %v1051_v9 = vpop.f32.mrf.mxu0  ;;  %v2678_v6 = vld [vmem:[%s3574_s4] ss:$0 sm:$0xff] }
 0x4cc   : > { %v1054_v11 = vsel %vm853_vm4, %v1051_v9, -inf }
 0x4cd   : > { %1055 = vmax.xlane.f32.xlu0 %v1054_v11  ;;  %v946_v12 = vsel %vm945_vm11, %v2691_v2, %v942_v8 }
 0x4ce   : > { %v951_v13 = vsel %vm948_vm12, %v950_v10, %v946_v12  ;;  %v2754_v12 = vmov 64.0  }
 0x4cf   : > { %v952_v15 = vmul.f32 %v2689_v60, %v951_v13  ;;  %v1387_v13 = vld [vmem:[%s2894_s1 + $0x380] sm:$0xff] }
 0x4d1   : > { %2617 = vmatmul.msk.f32.vlgmr.msrb.gmra.mxu2 %vm853_vm4, %v952_v15  ;;  %v1388_v15 = vld [vmem:[%s2894_s1 + $0x388] sm:$0xff] }
 0x4d2   : > { %2624 = vmatpush.xpose.msk.msrb.mxu2 %vm828_vm3, %v1131_v16  ;;  %v1389_v16 = vld [vmem:[%s2894_s1 + $0x390] sm:$0xff] }
 0x4d5   : > { %v1129_v17 = vpop.permute.xlu1 %1128 }
 0x4d9   : > { %2619 = vmatmul.msk.f32.vlgmr.msra.gmra.mxu2 %vm828_vm3, %v898_v53 }
 0x4da   : > { %1470 = vmatpush.msra.mxu2 %v1388_v15  ;;  %v1313_v15 = vld [vmem:[%s2894_s1 + $0x130] sm:$0xff] }
 0x4e1   : > { %2625 = vmatmul.msk.f32.vlgmr.msrb.gmra.mxu2 %vm828_vm3, %v1129_v17  ;;  %v1390_v17 = vld [vmem:[%s2894_s1 + $0x398] sm:$0xff] }
 0x540   : > { %v1056_v20 = vpop.xlane.xlu0 %1055 }
 0x541   : > { %v1057_v21 = vsub.f32 %v1051_v9, %v1056_v20 }
 0x543   : > { %v1058_v22 = vmul.f32 1.442695, %v1057_v21 }
 0x545   : > { %2692 = vpow2.f32 %v1058_v22 }
 0x54b   : > { %v2693_v23 = vpop.eup %2692 }
 0x54c   : > { %v1060_v24 = vsel %vm853_vm4, %v2693_v23, 0.0 }
 0x54d   : > { %1061 = vadd.xlane.f32.xlu1 %v1060_v24 }
 0x554   : > { %v977_v25 = vpop.f32.mrf.mxu2 }
 0x555   : > { %2618 = vmatmul.msk.f32.vlgmr.msra.gmra.mxu3 %vm828_vm3, %v977_v25 }
 0x556   : > { %1450 = vmatpush.msra.mxu3 %v1387_v13  ;;  %v1312_v13 = vld [vmem:[%s2894_s1 + $0x128] sm:$0xff] }
 0x55c   : > { %v2996_v26 = vpop.f32.mrf.mxu2 }
 0x564   : > { %v1153_v27 = vpop.f32.mrf.mxu2 }
 0x565   : > { %v1156_v28 = vsel %vm853_vm4, %v1153_v27, -inf }
 0x566   : > { %1157 = vmax.xlane.f32.xlu2 %v1156_v28  ;;  %v1371_v28 = vld [vmem:[%s2894_s1 + $0x300] sm:$0xff] }
 0x567   : > { %1451 = vmatpush.msra.mxu3 %v1371_v28 }
 0x57e   : > { %1078 = vrot.lane.b32.xlu2 %v2970_v38, %s2752_s30 }
 0x5c0   : > { %v1062_v29 = vpop.xlane.xlu1 %1061 }
 0x5c1   : > { %2694 = vrcp.f32 %v1062_v29  ;;  %v1074_v35 = vand.u32 2147483648, %v1062_v29  ;;  %vm1068_vm14 = vweird.f32 %v1062_v29  ;;  %v1072_v36 = vand.u32 2147483647, %v1062_v29 }
 0x5c3   : > { %v1075_v41 = vor.u32 1.1754944e-38, %v1074_v35  ;;  %vm1073_vm0 = vcmp.eq.f32.partialorder %v1072_v36, 8.507059e+37  ;;  %v1358_v35 = vld [vmem:[%s2894_s1 + $0x298] sm:$0xff]  ;;  %v1339_v36 = vld [vmem:[%s2894_s1 + $0x200] sm:$0xff] }
 0x5c7   : > { %v2695_v30 = vpop.eup %2694 }
 0x5c8   : > { %v1064_v31 = vmul.f32 %v2695_v30, %v1062_v29  ;;  %vm1069_vm13 = vweird.f32 %v2695_v30  ;;  %v1372_v29 = vld [vmem:[%s2894_s1 + $0x308] sm:$0xff] }
 0x5c9   : > { %vm1070_vm15 = vmor %vm1068_vm14, %vm1069_vm13  ;;  %1471 = vmatpush.msra.mxu2 %v1372_v29 }
 0x5ca   : > { %v1065_v32 = vsub.f32 1.0, %v1064_v31  ;;  %v1374_v31 = vld [vmem:[%s2894_s1 + $0x318] sm:$0xff] }
 0x5cc   : > { %v1066_v33 = vmul.f32 %v2695_v30, %v1065_v32  ;;  %v1355_v32 = vld [vmem:[%s2894_s1 + $0x280] sm:$0xff] }
 0x5cd   : > { %1452 = vmatpush.msra.mxu3 %v1355_v32 }
 0x5ce   : > { %v1067_v34 = vadd.f32 %v2695_v30, %v1066_v33  ;;  %v1356_v33 = vld [vmem:[%s2894_s1 + $0x288] sm:$0xff] }
 0x5cf   : > { %1472 = vmatpush.msra.mxu2 %v1356_v33  ;;  %1453 = vmatpush.msra.mxu3 %v1339_v36 }
 0x5d0   : > { %v1071_v40 = vsel %vm1070_vm15, %v2695_v30, %v1067_v34  ;;  %v1373_v30 = vld [vmem:[%s2894_s1 + $0x310] sm:$0xff] }
 0x5d1   : > { %v1076_v43 = vsel %vm1073_vm0, %v1075_v41, %v1071_v40  ;;  %v1357_v34 = vld [vmem:[%s2894_s1 + $0x290] sm:$0xff]  ;;  %v1342_v40 = vld [vmem:[%s2894_s1 + $0x218] sm:$0xff]  ;;  %v1323_v41 = vld [vmem:[%s2894_s1 + $0x180] sm:$0xff] }
 0x5d2   : > { %v1077_v45 = vmul.f32 %v2693_v23, %v1076_v43  ;;  %v1325_v43 = vld [vmem:[%s2894_s1 + $0x190] sm:$0xff]  ;;  %1454 = vmatpush.msra.mxu3 %v1323_v41 }
 0x5d8   : > { %v1000_v2 = vpop.f32.mrf.mxu3 }
 0x5d9   : > { %v1158_v37 = vpop.xlane.xlu2 %1157  ;;  %v1024_v4 = vadd.f32 %v2996_v26, %v1000_v2  ;;  %v1361_v2 = vld [vmem:[%s2894_s1 + $0x2b0] sm:$0xff] }
 0x5da   : > { %v1159_v39 = vsub.f32 %v1153_v27, %v1158_v37  ;;  %v1340_v37 = vld [vmem:[%s2894_s1 + $0x208] sm:$0xff] }
 0x5db   : > { %1473 = vmatpush.msra.mxu2 %v1340_v37  ;;  %v2680_v37 = vld [vmem:[%s3576_s15] ss:$0 sm:$0xff] }
 0x5dc   : > { %v1160_v42 = vmul.f32 1.442695, %v1159_v39  ;;  %v1341_v39 = vld [vmem:[%s2894_s1 + $0x210] sm:$0xff] }
 0x5de   : > { %2696 = vpow2.f32 %v1160_v42  ;;  %v1324_v42 = vld [vmem:[%s2894_s1 + $0x188] sm:$0xff] }
 0x5df   : > { %1474 = vmatpush.msra.mxu2 %v1324_v42  ;;  %v1395_v42 = vld [vmem:[%s2894_s1 + $0x3c0] sm:$0xff] }
 0x5e1   : > { %v1079_v44 = vpop.permute.xlu2 %1078 }
 0x5e2   : > { %1099 = vmatpush.msrb.mxu1 %v1079_v44  ;;  %v1326_v44 = vld [vmem:[%s2894_s1 + $0x198] sm:$0xff] }
 0x5e3   : > { %2622 = vmatmul.msk.f32.vlgmr.msrb.gmra.mxu1 %vm853_vm4, %v1077_v45  ;;  %v1307_v45 = vld [vmem:[%s2894_s1 + $0x100] sm:$0xff] }
 0x5e4   : > { %v2697_v46 = vpop.eup %2696  ;;  %1223 = vmatpush.msra.mxu1 %v824_v63  ;;  %1455 = vmatpush.msra.mxu3 %v1307_v45  ;;  %v1378_v63 = vld [vmem:[%s2894_s1 + $0x338] sm:$0xff] }
 0x5e5   : > { %v1162_v47 = vsel %vm853_vm4, %v2697_v46, 0.0  ;;  %v1398_v45 = vld [vmem:[%s2894_s1 + $0x3d8] sm:$0xff] }
 0x5e6   : > { %1163 = vadd.xlane.f32.xlu0 %v1162_v47  ;;  %1224 = vmatpush.msra.mxu1 %v823_v0  ;;  %v1309_v47 = vld [vmem:[%s2894_s1 + $0x110] sm:$0xff]  ;;  %v1359_v0 = vld [vmem:[%s2894_s1 + $0x2a0] sm:$0xff] }
 0x5e7   : > { %1456 = vmatpush.msra.mxu3 %v1291_v49  ;;  %v1363_v49 = vld [vmem:[%s2894_s1 + $0x2c0] sm:$0xff] }
 0x5e8   : > { %1510 = vmatpush.msrb.mxu1 %v1390_v17  ;;  %v1295_v17 = vld [vmem:[%s2894_s1 + $0xa0] sm:$0xff] }
 0x5ea   : > { %1511 = vmatpush.msrb.mxu1 %v1374_v31 }
 0x5ec   : > { %1512 = vmatpush.msrb.mxu1 %v1358_v35  ;;  %v2679_v35 = vld [vmem:[%s3575_s21] ss:$0 sm:$0xff] }
 0x5ee   : > { %1513 = vmatpush.msrb.mxu1 %v1342_v40 }
 0x5f0   : > { %1514 = vmatpush.msrb.mxu1 %v1326_v44  ;;  %v1397_v44 = vld [vmem:[%s2894_s1 + $0x3d0] sm:$0xff] }
 0x5f2   : > { %1515 = vmatpush.msrb.mxu1 %v1310_v48  ;;  %v1382_v48 = vld [vmem:[%s2894_s1 + $0x358] sm:$0xff] }
 0x5fa   : > { %1180 = vrot.lane.b32.xlu0 %v2970_v38, %s2753_s0  ;;  %s3578_s0 = sld [smem:[#allocation14_spill]] (!%p2644_p5) }
 0x659   : > { %v1164_v50 = vpop.xlane.xlu0 %1163 }
 0x65a   : > { %2698 = vrcp.f32 %v1164_v50  ;;  %v1176_v55 = vand.u32 2147483648, %v1164_v50  ;;  %v1174_v57 = vand.u32 2147483647, %v1164_v50  ;;  %vm1170_vm5 = vweird.f32 %v1164_v50 }
 0x65b   : > { %2700 = vrcp.f32 %v2754_v12  ;;  %v1311_v12 = vld [vmem:[%s2894_s1 + $0x120] sm:$0xff] }
 0x65c   : > { %v1177_v38 = vor.u32 1.1754944e-38, %v1176_v55  ;;  %vm1175_vm7 = vcmp.eq.f32.partialorder %v1174_v57, 8.507059e+37  ;;  %v1277_v55 = vld [vmem:[%s2894_s1 + $0x10] sm:$0xff]  ;;  %v1391_v57 = vld [vmem:[%s2894_s1 + $0x3a0] sm:$0xff] }
 0x660   : > { %v2699_v51 = vpop.eup %2698  ;;  %v1101_v52 = vpop.f32.mrf.mxu1 }
 0x661   : > { %v1166_v53 = vmul.f32 %v2699_v51, %v1164_v50  ;;  %2623 = vmatmul.msk.f32.vlgmr.msrb.gmra.mxu3 %vm828_vm3, %v1101_v52  ;;  %vm1171_vm1 = vweird.f32 %v2699_v51  ;;  %v2701_v18 = vpop.eup %2700  ;;  %v1292_v50 = vld [vmem:[%s2894_s1 + $0x88] sm:$0xff]  ;;  %v1294_v52 = vld [vmem:[%s2894_s1 + $0x98] sm:$0xff] }
 0x662   : > { %vm1172_vm6 = vmor %vm1170_vm5, %vm1171_vm1  ;;  %v1242_v19 = vmul.f32 64.0, %v2701_v18  ;;  %1516 = vmatpush.msrb.mxu1 %v1294_v52  ;;  %v1366_v52 = vld [vmem:[%s2894_s1 + $0x2d8] sm:$0xff] }
 0x663   : > { %v1167_v54 = vsub.f32 1.0, %v1166_v53  ;;  %v1275_v53 = vld [vmem:[%s2894_s1] sm:$0xff] }
 0x664   : > { %v1243_v20 = vsub.f32 1.0, %v1242_v19  ;;  %1457 = vmatpush.msra.mxu3 %v1275_v53  ;;  %v1297_v19 = vld [vmem:[%s2894_s1 + $0xb0] sm:$0xff]  ;;  %v1347_v53 = vld [vmem:[%s2894_s1 + $0x240] sm:$0xff] }
 0x665   : > { %v1168_v56 = vmul.f32 %v2699_v51, %v1167_v54  ;;  %v1276_v54 = vld [vmem:[%s2894_s1 + $0x8] sm:$0xff] }
 0x666   : > { %1530 = vmatpush.msrb.mxu3 %v1391_v57  ;;  %v1331_v57 = vld [vmem:[%s2894_s1 + $0x1c0] sm:$0xff] }
 0x667   : > { %v1169_v58 = vadd.f32 %v2699_v51, %v1168_v56  ;;  %v1278_v56 = vld [vmem:[%s2894_s1 + $0x18] sm:$0xff] }
 0x668   : > { %1517 = vmatpush.msrb.mxu1 %v1278_v56  ;;  %v1350_v56 = vld [vmem:[%s2894_s1 + $0x258] sm:$0xff] }
 0x669   : > { %v1173_v59 = vsel %vm1172_vm6, %v2699_v51, %v1169_v58  ;;  %v1293_v51 = vld [vmem:[%s2894_s1 + $0x90] sm:$0xff]  ;;  %v1392_v58 = vld [vmem:[%s2894_s1 + $0x3a8] sm:$0xff] }
 0x66a   : > { %v1178_v60 = vsel %vm1175_vm7, %v1177_v38, %v1173_v59  ;;  %v1393_v38 = vld [vmem:[%s2894_s1 + $0x3b0] sm:$0xff]  ;;  %v1394_v59 = vld [vmem:[%s2894_s1 + $0x3b8] sm:$0xff] }
 0x66b   : > { %v1179_v61 = vmul.f32 %v2697_v46, %v1178_v60  ;;  %v1308_v46 = vld [vmem:[%s2894_s1 + $0x108] sm:$0xff]  ;;  %v1375_v60 = vld [vmem:[%s2894_s1 + $0x320] sm:$0xff] }
 0x66c   : > { %v1181_v62 = vpop.permute.xlu0 %1180  ;;  %1475 = vmatpush.msra.mxu2 %v1308_v46  ;;  %1531 = vmatpush.msrb.mxu3 %v1375_v60  ;;  %v1380_v46 = vld [vmem:[%s2894_s1 + $0x348] sm:$0xff]  ;;  %v1315_v60 = vld [vmem:[%s2894_s1 + $0x140] sm:$0xff] }
 0x66d   : > { %1201 = vmatpush.msra.mxu0 %v1181_v62  ;;  %v1377_v62 = vld [vmem:[%s2894_s1 + $0x330] sm:$0xff] }
 0x66e   : > { %2626 = vmatmul.msk.f32.vlgmr.msra.gmra.mxu0 %vm853_vm4, %v1179_v61  ;;  %1476 = vmatpush.msra.mxu2 %v1292_v50  ;;  %v1376_v61 = vld [vmem:[%s2894_s1 + $0x328] sm:$0xff] }
 0x66f   : > { %1490 = vmatpush.msrb.mxu0 %v1389_v16  ;;  %1532 = vmatpush.msrb.mxu3 %v1359_v0  ;;  %v1314_v16 = vld [vmem:[%s2894_s1 + $0x138] sm:$0xff]  ;;  %v1364_v50 = vld [vmem:[%s2894_s1 + $0x2c8] sm:$0xff]  ;;  %v1299_v0 = vld [vmem:[%s2894_s1 + $0xc0] sm:$0xff] }
 0x670   : > { %1477 = vmatpush.msra.mxu2 %v1276_v54  ;;  %v1348_v54 = vld [vmem:[%s2894_s1 + $0x248] sm:$0xff] }
 0x671   : > { %1491 = vmatpush.msrb.mxu0 %v1373_v30 }
 0x672   : > { %1550 = vmatpush.msrb.mxu2 %v1392_v58  ;;  %v1332_v58 = vld [vmem:[%s2894_s1 + $0x1c8] sm:$0xff] }
 0x673   : > { %1492 = vmatpush.msrb.mxu0 %v1357_v34 }
 0x674   : > { %1551 = vmatpush.msrb.mxu2 %v1376_v61  ;;  %v1316_v61 = vld [vmem:[%s2894_s1 + $0x148] sm:$0xff] }
 0x675   : > { %1493 = vmatpush.msrb.mxu0 %v1341_v39 }
 0x677   : > { %1494 = vmatpush.msrb.mxu0 %v1325_v43  ;;  %v1396_v43 = vld [vmem:[%s2894_s1 + $0x3c8] sm:$0xff] }
 0x679   : > { %1495 = vmatpush.msrb.mxu0 %v1309_v47  ;;  %v1381_v47 = vld [vmem:[%s2894_s1 + $0x350] sm:$0xff] }
 0x67b   : > { %1496 = vmatpush.msrb.mxu0 %v1293_v51  ;;  %v1365_v51 = vld [vmem:[%s2894_s1 + $0x2d0] sm:$0xff] }
 0x67d   : > { %1497 = vmatpush.msrb.mxu0 %v1277_v55  ;;  %v1349_v55 = vld [vmem:[%s2894_s1 + $0x250] sm:$0xff] }
 0x67f   : > { %1570 = vmatpush.msra.mxu0 %v1393_v38  ;;  %v1333_v38 = vld [vmem:[%s2894_s1 + $0x1d0] sm:$0xff] }
 0x681   : > { %1571 = vmatpush.msra.mxu0 %v1377_v62  ;;  %v1317_v62 = vld [vmem:[%s2894_s1 + $0x150] sm:$0xff] }
 0x683   : > { %1572 = vmatpush.msra.mxu0 %v1361_v2  ;;  %v1301_v2 = vld [vmem:[%s2894_s1 + $0xd0] sm:$0xff] }
 0x6e4   : > { %v1124_v3 = vpop.f32.mrf.mxu3 }
 0x6e5   : > { %v1127_v5 = vadd.f32 %v1124_v3, %v1024_v4  ;;  %v1362_v3 = vld [vmem:[%s2894_s1 + $0x2b8] sm:$0xff]  ;;  %v1343_v4 = vld [vmem:[%s2894_s1 + $0x220] sm:$0xff] }
 0x6e6   : > { %1533 = vmatpush.msrb.mxu3 %v1343_v4  ;;  %v1283_v4 = vld [vmem:[%s2894_s1 + $0x40] sm:$0xff] }
 0x6eb   : > { %v1203_v1 = vpop.f32.mrf.mxu0 }
 0x6ec   : > { %2627 = vmatmul.msk.f32.vlgmr.msra.gmra.mxu1 %vm828_vm3, %v1203_v1  ;;  %vm1246_vm3 = vweird.f32 %v2701_v18  ;;  %v1360_v1 = vld [vmem:[%s2894_s1 + $0x2a8] sm:$0xff] }
 0x6ed   : > { %1590 = vmatpush.msra.mxu1 %v1394_v59  ;;  %1552 = vmatpush.msrb.mxu2 %v1360_v1  ;;  %v1334_v59 = vld [vmem:[%s2894_s1 + $0x1d8] sm:$0xff]  ;;  %v1300_v1 = vld [vmem:[%s2894_s1 + $0xc8] sm:$0xff] }
 0x6ef   : > { %1591 = vmatpush.msra.mxu1 %v1378_v63  ;;  %v1318_v63 = vld [vmem:[%s2894_s1 + $0x158] sm:$0xff] }
 0x6f1   : > { %1592 = vmatpush.msra.mxu1 %v1362_v3  ;;  %v1302_v3 = vld [vmem:[%s2894_s1 + $0xd8] sm:$0xff] }
 0x769   : > { %v1226_v7 = vpop.f32.mrf.mxu1 }
 0x76a   : > { %v1229_v8 = vadd.f32 %v1226_v7, %v1127_v5  ;;  %v1344_v5 = vld [vmem:[%s2894_s1 + $0x228] sm:$0xff]  ;;  %v1346_v7 = vld [vmem:[%s2894_s1 + $0x238] sm:$0xff] }
 0x76b   : > { %1553 = vmatpush.msrb.mxu2 %v1344_v5  ;;  %1593 = vmatpush.msra.mxu1 %v1346_v7  ;;  %v1284_v5 = vld [vmem:[%s2894_s1 + $0x48] sm:$0xff]  ;;  %v1286_v7 = vld [vmem:[%s2894_s1 + $0x58] sm:$0xff] }
 0x76c   : > { %v1234_v9 = vadd.f32 %v2678_v6, %v1229_v8  ;;  %v1345_v6 = vld [vmem:[%s2894_s1 + $0x230] sm:$0xff]  ;;  %v1327_v8 = vld [vmem:[%s2894_s1 + $0x1a0] sm:$0xff] }
 0x76d   : > { %1573 = vmatpush.msra.mxu0 %v1345_v6  ;;  %1534 = vmatpush.msrb.mxu3 %v1327_v8  ;;  %v1285_v6 = vld [vmem:[%s2894_s1 + $0x50] sm:$0xff]  ;;  %v1399_v8 = vld [vmem:[%s2894_s1 + $0x3e0] sm:$0xff] }
 0x76e   : > { %v1235_v10 = vadd.f32 %v1234_v9, %v2941_v14  ;;  %v1244_v14 = vmul.f32 %v2701_v18, %v1243_v20  ;;  %v1328_v9 = vld [vmem:[%s2894_s1 + $0x1a8] sm:$0xff]  ;;  %v1298_v20 = vld [vmem:[%s2894_s1 + $0xb8] sm:$0xff] }
 0x76f   : > { %1554 = vmatpush.msrb.mxu2 %v1328_v9  ;;  %1535 = vmatpush.msrb.mxu3 %v1311_v12  ;;  %v1400_v9 = vld [vmem:[%s2894_s1 + $0x3e8] sm:$0xff]  ;;  %v1383_v12 = vld [vmem:[%s2894_s1 + $0x360] sm:$0xff] }
 0x770   : > { %v1238_v11 = vsel %vm773_vm2, %v1235_v10, 0.0  ;;  %v1245_v21 = vadd.f32 %v2701_v18, %v1244_v14  ;;  %v1279_v14 = vld [vmem:[%s2894_s1 + $0x20] sm:$0xff] }
 0x771   : > { %1239 = vadd.xlane.f32.xlu1 %v1238_v11  ;;  %v1330_v11 = vld [vmem:[%s2894_s1 + $0x1b8] sm:$0xff]  ;;  %1555 = vmatpush.msrb.mxu2 %v1312_v13  ;;  %v1384_v13 = vld [vmem:[%s2894_s1 + $0x368] sm:$0xff] }
 0x772   : > { %v3024_v22 = vsel %vm1246_vm3, %v2701_v18, %v1245_v21  ;;  %1594 = vmatpush.msra.mxu1 %v1330_v11  ;;  %v1296_v18 = vld [vmem:[%s2894_s1 + $0xa8] sm:$0xff]  ;;  %1536 = vmatpush.msrb.mxu3 %v1295_v17  ;;  %v1402_v11 = vld [vmem:[%s2894_s1 + $0x3f8] sm:$0xff]  ;;  %v1367_v17 = vld [vmem:[%s2894_s1 + $0x2e0] sm:$0xff] }
 0x773   : > { %v1280_v21 = vld [vmem:[%s2894_s1 + $0x28] sm:$0xff]  ;;  %1556 = vmatpush.msrb.mxu2 %v1296_v18 }
 0x774   : > { %1595 = vmatpush.msra.mxu1 %v1314_v16  ;;  %1537 = vmatpush.msrb.mxu3 %v1279_v14  ;;  %v1386_v16 = vld [vmem:[%s2894_s1 + $0x378] sm:$0xff]  ;;  %v1368_v18 = vld [vmem:[%s2894_s1 + $0x2e8] sm:$0xff]  ;;  %v1351_v14 = vld [vmem:[%s2894_s1 + $0x260] sm:$0xff] }
 0x775   : > { %1557 = vmatpush.msrb.mxu2 %v1280_v21  ;;  %v1352_v21 = vld [vmem:[%s2894_s1 + $0x268] sm:$0xff] }
 0x776   : > { %1596 = vmatpush.msra.mxu1 %v1298_v20  ;;  %v1370_v20 = vld [vmem:[%s2894_s1 + $0x2f8] sm:$0xff] }
 0x7e4   : > { %v1240_v23 = vpop.xlane.xlu1 %1239 }
 0x7e5   : > { %v1248_v24 = vmul.f32 %v3024_v22, %v1240_v23  ;;  %v1281_v23 = vld [vmem:[%s2894_s1 + $0x30] sm:$0xff] }
 0x7e7   : > { %v3027_v25 = vsub.f32 %v1235_v10, %v1248_v24  ;;  %v1329_v10 = vld [vmem:[%s2894_s1 + $0x1b0] sm:$0xff]  ;;  %v1282_v24 = vld [vmem:[%s2894_s1 + $0x38] sm:$0xff] }
 0x7e8   : > { %1574 = vmatpush.msra.mxu0 %v1329_v10  ;;  %1597 = vmatpush.msra.mxu1 %v1282_v24  ;;  %v1401_v10 = vld [vmem:[%s2894_s1 + $0x3f0] sm:$0xff]  ;;  %v1354_v24 = vld [vmem:[%s2894_s1 + $0x278] sm:$0xff] }
 0x7e9   : > { %v1250_v26 = vmul.f32 %v3027_v25, %v3027_v25 }
 0x7ea   : > { %1575 = vmatpush.msra.mxu0 %v1313_v15  ;;  %v1385_v15 = vld [vmem:[%s2894_s1 + $0x370] sm:$0xff] }
 0x7eb   : > { %v1251_v27 = vsel %vm773_vm2, %v1250_v26, 0.0 }
 0x7ec   : > { %1252 = vadd.xlane.f32.xlu2 %v1251_v27  ;;  %1576 = vmatpush.msra.mxu0 %v1297_v19  ;;  %v1369_v19 = vld [vmem:[%s2894_s1 + $0x2f0] sm:$0xff] }
 0x7ee   : > { %1577 = vmatpush.msra.mxu0 %v1281_v23  ;;  %v1353_v23 = vld [vmem:[%s2894_s1 + $0x270] sm:$0xff] }
 0x85f   : > { %v1253_v26 = vpop.xlane.xlu2 %1252 }
 0x860   : > { %v1254_v27 = vmul.f32 %v1253_v26, %v3024_v22  ;;  %v1335_v26 = vld [vmem:[%s2894_s1 + $0x1e0] sm:$0xff] }
 0x862   : > { %v1255_v28 = vadd.f32 1e-05, %v1254_v27  ;;  %v1336_v27 = vld [vmem:[%s2894_s1 + $0x1e8] sm:$0xff] }
 0x864   : > { %2702 = vrsqrt.f32 %v1255_v28  ;;  %vm1262_vm8 = vweird.f32 %v1255_v28 }
 0x86a   : > { %v2703_v29 = vpop.eup %2702 }
 0x86b   : > { %v1257_v30 = vmul.f32 %v2703_v29, %v1255_v28  ;;  %vm1263_vm4 = vweird.f32 %v2703_v29  ;;  %v1337_v28 = vld [vmem:[%s2894_s1 + $0x1f0] sm:$0xff] }
 0x86c   : > { %vm1264_vm9 = vmor %vm1262_vm8, %vm1263_vm4 }
 0x86d   : > { %v1258_v31 = vmul.f32 %v2703_v29, %v1257_v30  ;;  %v1319_v30 = vld [vmem:[%s2894_s1 + $0x160] sm:$0xff] }
 0x86f   : > { %v1259_v32 = vmul.f32 0.5, %v1258_v31  ;;  %v1320_v31 = vld [vmem:[%s2894_s1 + $0x168] sm:$0xff] }
 0x871   : > { %v1260_v33 = vsub.f32 1.5, %v1259_v32  ;;  %v1321_v32 = vld [vmem:[%s2894_s1 + $0x170] sm:$0xff] }
 0x873   : > { %v1261_v34 = vmul.f32 %v2703_v29, %v1260_v33  ;;  %v1322_v33 = vld [vmem:[%s2894_s1 + $0x178] sm:$0xff] }
 0x875   : > { %v1265_v36 = vsel %vm1264_vm9, %v2703_v29, %v1261_v34  ;;  %v1338_v29 = vld [vmem:[%s2894_s1 + $0x1f8] sm:$0xff]  ;;  %v1303_v34 = vld [vmem:[%s2894_s1 + $0xe0] sm:$0xff] }
 0x876   : > { %v1266_v39 = vmul.f32 %v1265_v36, %v3027_v25  ;;  %v1379_v25 = vld [vmem:[%s2894_s1 + $0x340] sm:$0xff]  ;;  %v1305_v36 = vld [vmem:[%s2894_s1 + $0xf0] sm:$0xff] }
 0x878   : > { %v1270_v40 = vmul.f32 %v2679_v35, %v1266_v39  ;;  %v1304_v35 = vld [vmem:[%s2894_s1 + $0xe8] sm:$0xff]  ;;  %v1287_v39 = vld [vmem:[%s2894_s1 + $0x60] sm:$0xff] }
 0x87a   : > { %v3104_v41 = vadd.f32 %v2680_v37, %v1270_v40  ;;  %v1306_v37 = vld [vmem:[%s2894_s1 + $0xf8] sm:$0xff]  ;;  %v1288_v40 = vld [vmem:[%s2894_s1 + $0x68] sm:$0xff] }
 0x87c   : > { %2628 = vmatmul.msk.f32.vlgmr.msra.gmra.mxu3 %vm773_vm2, %v3104_v41  ;;  %2629 = vmatmul.msk.f32.vlgmr.msra.gmra.mxu2 %vm773_vm2, %v3104_v41 }
 0x87d   : > { %2630 = vmatmul.msk.f32.vlgmr.msrb.gmra.mxu0 %vm773_vm2, %v3104_v41  ;;  %2631 = vmatmul.msk.f32.vlgmr.msrb.gmra.mxu1 %vm773_vm2, %v3104_v41 }
 0x87e   : > { %1610 = vmatpush.msra.mxu3 %v1395_v42  ;;  %1630 = vmatpush.msra.mxu2 %v1396_v43  ;;  %v1289_v42 = vld [vmem:[%s2894_s1 + $0x70] sm:$0xff]  ;;  %v1290_v43 = vld [vmem:[%s2894_s1 + $0x78] sm:$0xff] }
 0x87f   : > { %1650 = vmatpush.msrb.mxu0 %v1397_v44  ;;  %1670 = vmatpush.msrb.mxu1 %v1398_v45  ;;  %v1825_v44 = vld [vmem:[%s2906_s29 + $0x178] sm:$0xff] }
 0x880   : > { %1611 = vmatpush.msra.mxu3 %v1379_v25  ;;  %1631 = vmatpush.msra.mxu2 %v1380_v46  ;;  %v1841_v45 = vld [vmem:[%s2906_s29 + $0x1f8] sm:$0xff] }
 0x881   : > { %1651 = vmatpush.msrb.mxu0 %v1381_v47  ;;  %1671 = vmatpush.msrb.mxu1 %v1382_v48  ;;  %v1793_v25 = vld [vmem:[%s2906_s29 + $0x78] sm:$0xff]  ;;  %v1824_v47 = vld [vmem:[%s2906_s29 + $0x170] sm:$0xff] }
 0x882   : > { %1612 = vmatpush.msra.mxu3 %v1363_v49  ;;  %1632 = vmatpush.msra.mxu2 %v1364_v50  ;;  %v1809_v46 = vld [vmem:[%s2906_s29 + $0xf8] sm:$0xff]  ;;  %v1840_v48 = vld [vmem:[%s2906_s29 + $0x1f0] sm:$0xff] }
 0x883   : > { %1652 = vmatpush.msrb.mxu0 %v1365_v51  ;;  %1672 = vmatpush.msrb.mxu1 %v1366_v52  ;;  %v1792_v49 = vld [vmem:[%s2906_s29 + $0x70] sm:$0xff]  ;;  %v1823_v51 = vld [vmem:[%s2906_s29 + $0x168] sm:$0xff] }
 0x884   : > { %1613 = vmatpush.msra.mxu3 %v1347_v53  ;;  %1633 = vmatpush.msra.mxu2 %v1348_v54  ;;  %v1808_v50 = vld [vmem:[%s2906_s29 + $0xf0] sm:$0xff]  ;;  %v1839_v52 = vld [vmem:[%s2906_s29 + $0x1e8] sm:$0xff] }
 0x885   : > { %1653 = vmatpush.msrb.mxu0 %v1349_v55  ;;  %1673 = vmatpush.msrb.mxu1 %v1350_v56  ;;  %v1791_v53 = vld [vmem:[%s2906_s29 + $0x68] sm:$0xff]  ;;  %v1822_v55 = vld [vmem:[%s2906_s29 + $0x160] sm:$0xff] }
 0x886   : > { %2632 = vmatmul.msk.f32.vlgmr.msrb.gmra.mxu3 %vm773_vm2, %v3104_v41  ;;  %2633 = vmatmul.msk.f32.vlgmr.msrb.gmra.mxu2 %vm773_vm2, %v3104_v41  ;;  %v1807_v54 = vld [vmem:[%s2906_s29 + $0xe8] sm:$0xff]  ;;  %v1838_v56 = vld [vmem:[%s2906_s29 + $0x1e0] sm:$0xff] }
 0x887   : > { %2634 = vmatmul.msk.f32.vlgmr.msra.gmra.mxu0 %vm773_vm2, %v3104_v41  ;;  %2635 = vmatmul.msk.f32.vlgmr.msra.gmra.mxu1 %vm773_vm2, %v3104_v41 }
 0x888   : > { %1614 = vmatpush.msra.mxu3 %v1331_v57  ;;  %1634 = vmatpush.msra.mxu2 %v1332_v58  ;;  %v1790_v57 = vld [vmem:[%s2906_s29 + $0x60] sm:$0xff] }
 0x889   : > { %1654 = vmatpush.msrb.mxu0 %v1333_v38  ;;  %1674 = vmatpush.msrb.mxu1 %v1334_v59  ;;  %v1806_v58 = vld [vmem:[%s2906_s29 + $0xe0] sm:$0xff]  ;;  %v1821_v38 = vld [vmem:[%s2906_s29 + $0x158] sm:$0xff] }
 0x88a   : > { %1615 = vmatpush.msra.mxu3 %v1315_v60  ;;  %1635 = vmatpush.msra.mxu2 %v1316_v61  ;;  %v1837_v59 = vld [vmem:[%s2906_s29 + $0x1d8] sm:$0xff] }
 0x88b   : > { %1655 = vmatpush.msrb.mxu0 %v1317_v62  ;;  %1675 = vmatpush.msrb.mxu1 %v1318_v63  ;;  %v1789_v60 = vld [vmem:[%s2906_s29 + $0x58] sm:$0xff]  ;;  %v1820_v62 = vld [vmem:[%s2906_s29 + $0x150] sm:$0xff] }
 0x88c   : > { %1616 = vmatpush.msra.mxu3 %v1299_v0  ;;  %1636 = vmatpush.msra.mxu2 %v1300_v1  ;;  %v1805_v61 = vld [vmem:[%s2906_s29 + $0xd8] sm:$0xff]  ;;  %v1836_v63 = vld [vmem:[%s2906_s29 + $0x1d0] sm:$0xff] }
 0x88d   : > { %1656 = vmatpush.msrb.mxu0 %v1301_v2  ;;  %1676 = vmatpush.msrb.mxu1 %v1302_v3  ;;  %v1788_v0 = vld [vmem:[%s2906_s29 + $0x50] sm:$0xff]  ;;  %v1819_v2 = vld [vmem:[%s2906_s29 + $0x148] sm:$0xff] }
 0x88e   : > { %1617 = vmatpush.msra.mxu3 %v1283_v4  ;;  %1637 = vmatpush.msra.mxu2 %v1284_v5  ;;  %v1804_v1 = vld [vmem:[%s2906_s29 + $0xd0] sm:$0xff]  ;;  %v1835_v3 = vld [vmem:[%s2906_s29 + $0x1c8] sm:$0xff] }
 0x88f   : > { %1657 = vmatpush.msrb.mxu0 %v1285_v6  ;;  %1677 = vmatpush.msrb.mxu1 %v1286_v7  ;;  %v1787_v4 = vld [vmem:[%s2906_s29 + $0x48] sm:$0xff]  ;;  %v1818_v6 = vld [vmem:[%s2906_s29 + $0x140] sm:$0xff] }
 0x890   : > { %1690 = vmatpush.msrb.mxu3 %v1399_v8  ;;  %1710 = vmatpush.msrb.mxu2 %v1400_v9  ;;  %v1803_v5 = vld [vmem:[%s2906_s29 + $0xc8] sm:$0xff]  ;;  %v1834_v7 = vld [vmem:[%s2906_s29 + $0x1c0] sm:$0xff] }
 0x891   : > { %1730 = vmatpush.msra.mxu0 %v1401_v10  ;;  %1750 = vmatpush.msra.mxu1 %v1402_v11  ;;  %v1786_v8 = vld [vmem:[%s2906_s29 + $0x40] sm:$0xff]  ;;  %v1817_v10 = vld [vmem:[%s2906_s29 + $0x138] sm:$0xff] }
 0x892   : > { %2636 = vmatmul.msk.f32.vlgmr.msra.gmra.mxu3 %vm773_vm2, %v3104_v41  ;;  %2637 = vmatmul.msk.f32.vlgmr.msra.gmra.mxu2 %vm773_vm2, %v3104_v41  ;;  %v1802_v9 = vld [vmem:[%s2906_s29 + $0xc0] sm:$0xff]  ;;  %v1833_v11 = vld [vmem:[%s2906_s29 + $0x1b8] sm:$0xff] }
 0x893   : > { %2638 = vmatmul.msk.f32.vlgmr.msrb.gmra.mxu0 %vm773_vm2, %v3104_v41  ;;  %2639 = vmatmul.msk.f32.vlgmr.msrb.gmra.mxu1 %vm773_vm2, %v3104_v41 }
 0x894   : > { %1691 = vmatpush.msrb.mxu3 %v1383_v12  ;;  %1711 = vmatpush.msrb.mxu2 %v1384_v13  ;;  %v1785_v12 = vld [vmem:[%s2906_s29 + $0x38] sm:$0xff] }
 0x895   : > { %1731 = vmatpush.msra.mxu0 %v1385_v15  ;;  %1751 = vmatpush.msra.mxu1 %v1386_v16  ;;  %v1801_v13 = vld [vmem:[%s2906_s29 + $0xb8] sm:$0xff]  ;;  %v1816_v15 = vld [vmem:[%s2906_s29 + $0x130] sm:$0xff] }
 0x896   : > { %1692 = vmatpush.msrb.mxu3 %v1367_v17  ;;  %1712 = vmatpush.msrb.mxu2 %v1368_v18  ;;  %v1832_v16 = vld [vmem:[%s2906_s29 + $0x1b0] sm:$0xff] }
 0x897   : > { %1732 = vmatpush.msra.mxu0 %v1369_v19  ;;  %1752 = vmatpush.msra.mxu1 %v1370_v20  ;;  %v1784_v17 = vld [vmem:[%s2906_s29 + $0x30] sm:$0xff]  ;;  %v1815_v19 = vld [vmem:[%s2906_s29 + $0x128] sm:$0xff] }
 0x898   : > { %1693 = vmatpush.msrb.mxu3 %v1351_v14  ;;  %1713 = vmatpush.msrb.mxu2 %v1352_v21  ;;  %v1800_v18 = vld [vmem:[%s2906_s29 + $0xb0] sm:$0xff]  ;;  %v1831_v20 = vld [vmem:[%s2906_s29 + $0x1a8] sm:$0xff] }
 0x899   : > { %1733 = vmatpush.msra.mxu0 %v1353_v23  ;;  %1753 = vmatpush.msra.mxu1 %v1354_v24  ;;  %v1783_v14 = vld [vmem:[%s2906_s29 + $0x28] sm:$0xff]  ;;  %v1814_v23 = vld [vmem:[%s2906_s29 + $0x120] sm:$0xff] }
 0x89a   : > { %1694 = vmatpush.msrb.mxu3 %v1335_v26  ;;  %1714 = vmatpush.msrb.mxu2 %v1336_v27  ;;  %v1799_v21 = vld [vmem:[%s2906_s29 + $0xa8] sm:$0xff]  ;;  %v1830_v24 = vld [vmem:[%s2906_s29 + $0x1a0] sm:$0xff] }
 0x89b   : > { %1734 = vmatpush.msra.mxu0 %v1337_v28  ;;  %1754 = vmatpush.msra.mxu1 %v1338_v29  ;;  %v1782_v26 = vld [vmem:[%s2906_s29 + $0x20] sm:$0xff]  ;;  %v1813_v28 = vld [vmem:[%s2906_s29 + $0x118] sm:$0xff] }
 0x89c   : > { %1695 = vmatpush.msrb.mxu3 %v1319_v30  ;;  %1715 = vmatpush.msrb.mxu2 %v1320_v31  ;;  %v1798_v27 = vld [vmem:[%s2906_s29 + $0xa0] sm:$0xff]  ;;  %v1829_v29 = vld [vmem:[%s2906_s29 + $0x198] sm:$0xff] }
 0x89d   : > { %1735 = vmatpush.msra.mxu0 %v1321_v32  ;;  %1755 = vmatpush.msra.mxu1 %v1322_v33  ;;  %v1781_v30 = vld [vmem:[%s2906_s29 + $0x18] sm:$0xff]  ;;  %v1812_v32 = vld [vmem:[%s2906_s29 + $0x110] sm:$0xff] }
 0x89e   : > { %1696 = vmatpush.msrb.mxu3 %v1303_v34  ;;  %1716 = vmatpush.msrb.mxu2 %v1304_v35  ;;  %v1797_v31 = vld [vmem:[%s2906_s29 + $0x98] sm:$0xff]  ;;  %v1828_v33 = vld [vmem:[%s2906_s29 + $0x190] sm:$0xff] }
 0x89f   : > { %1736 = vmatpush.msra.mxu0 %v1305_v36  ;;  %1756 = vmatpush.msra.mxu1 %v1306_v37  ;;  %v1780_v34 = vld [vmem:[%s2906_s29 + $0x10] sm:$0xff]  ;;  %v1811_v36 = vld [vmem:[%s2906_s29 + $0x108] sm:$0xff] }
 0x8a0   : > { %1697 = vmatpush.msrb.mxu3 %v1287_v39  ;;  %1717 = vmatpush.msrb.mxu2 %v1288_v40  ;;  %v1796_v35 = vld [vmem:[%s2906_s29 + $0x90] sm:$0xff]  ;;  %v1827_v37 = vld [vmem:[%s2906_s29 + $0x188] sm:$0xff] }
 0x8a1   : > { %1737 = vmatpush.msra.mxu0 %v1289_v42  ;;  %1757 = vmatpush.msra.mxu1 %v1290_v43  ;;  %v1779_v39 = vld [vmem:[%s2906_s29 + $0x8] sm:$0xff]  ;;  %v1810_v42 = vld [vmem:[%s2906_s29 + $0x100] sm:$0xff] }
 0x8a2   : > { %2640 = vmatmul.msk.f32.vlgmr.msrb.gmra.mxu3 %vm773_vm2, %v3104_v41  ;;  %2641 = vmatmul.msk.f32.vlgmr.msrb.gmra.mxu2 %vm773_vm2, %v3104_v41  ;;  %v1795_v40 = vld [vmem:[%s2906_s29 + $0x88] sm:$0xff]  ;;  %v1826_v43 = vld [vmem:[%s2906_s29 + $0x180] sm:$0xff] }
 0x8a3   : > { %2642 = vmatmul.msk.f32.vlgmr.msra.gmra.mxu0 %vm773_vm2, %v3104_v41  ;;  %2643 = vmatmul.msk.f32.vlgmr.msra.gmra.mxu1 %vm773_vm2, %v3104_v41 }
 0x8a4   : > { %2078 = vmatpush.msrb.mxu0 %v1825_v44  ;;  %2098 = vmatpush.msrb.mxu1 %v1841_v45  ;;  %v1889_v44 = vld [vmem:[%s2906_s29 + $0x378] sm:$0xff] }
 0x8a5   : > { %2038 = vmatpush.msra.mxu3 %v1793_v25  ;;  %2058 = vmatpush.msra.mxu2 %v1809_v46  ;;  %v1905_v45 = vld [vmem:[%s2906_s29 + $0x3f8] sm:$0xff]  ;;  %v1778_v25 = vld [vmem:[%s2906_s29] sm:$0xff] }
 0x8a6   : > { %2079 = vmatpush.msrb.mxu0 %v1824_v47  ;;  %2099 = vmatpush.msrb.mxu1 %v1840_v48  ;;  %v1794_v46 = vld [vmem:[%s2906_s29 + $0x80] sm:$0xff]  ;;  %v1888_v47 = vld [vmem:[%s2906_s29 + $0x370] sm:$0xff] }
 0x8a7   : > { %2039 = vmatpush.msra.mxu3 %v1792_v49  ;;  %2059 = vmatpush.msra.mxu2 %v1808_v50  ;;  %v1904_v48 = vld [vmem:[%s2906_s29 + $0x3f0] sm:$0xff]  ;;  %v1857_v49 = vld [vmem:[%s2906_s29 + $0x278] sm:$0xff] }
 0x8a8   : > { %2080 = vmatpush.msrb.mxu0 %v1823_v51  ;;  %2100 = vmatpush.msrb.mxu1 %v1839_v52  ;;  %v1873_v50 = vld [vmem:[%s2906_s29 + $0x2f8] sm:$0xff]  ;;  %v1887_v51 = vld [vmem:[%s2906_s29 + $0x368] sm:$0xff] }
 0x8a9   : > { %2040 = vmatpush.msra.mxu3 %v1791_v53  ;;  %2060 = vmatpush.msra.mxu2 %v1807_v54  ;;  %v1903_v52 = vld [vmem:[%s2906_s29 + $0x3e8] sm:$0xff]  ;;  %v1856_v53 = vld [vmem:[%s2906_s29 + $0x270] sm:$0xff] }
 0x8aa   : > { %2081 = vmatpush.msrb.mxu0 %v1822_v55  ;;  %2101 = vmatpush.msrb.mxu1 %v1838_v56  ;;  %v1872_v54 = vld [vmem:[%s2906_s29 + $0x2f0] sm:$0xff]  ;;  %v1886_v55 = vld [vmem:[%s2906_s29 + $0x360] sm:$0xff] }
 0x8ab   : > { %2041 = vmatpush.msra.mxu3 %v1790_v57  ;;  %2061 = vmatpush.msra.mxu2 %v1806_v58  ;;  %v1902_v56 = vld [vmem:[%s2906_s29 + $0x3e0] sm:$0xff]  ;;  %v1855_v57 = vld [vmem:[%s2906_s29 + $0x268] sm:$0xff] }
 0x8ac   : > { %2082 = vmatpush.msrb.mxu0 %v1821_v38  ;;  %2102 = vmatpush.msrb.mxu1 %v1837_v59  ;;  %v1871_v58 = vld [vmem:[%s2906_s29 + $0x2e8] sm:$0xff]  ;;  %v1885_v38 = vld [vmem:[%s2906_s29 + $0x358] sm:$0xff] }
 0x8ad   : > { %2042 = vmatpush.msra.mxu3 %v1789_v60  ;;  %2062 = vmatpush.msra.mxu2 %v1805_v61  ;;  %v1901_v59 = vld [vmem:[%s2906_s29 + $0x3d8] sm:$0xff]  ;;  %v1854_v60 = vld [vmem:[%s2906_s29 + $0x260] sm:$0xff] }
 0x8ae   : > { %2083 = vmatpush.msrb.mxu0 %v1820_v62  ;;  %2103 = vmatpush.msrb.mxu1 %v1836_v63  ;;  %v1870_v61 = vld [vmem:[%s2906_s29 + $0x2e0] sm:$0xff]  ;;  %v1884_v62 = vld [vmem:[%s2906_s29 + $0x350] sm:$0xff] }
 0x8af   : > { %2043 = vmatpush.msra.mxu3 %v1788_v0  ;;  %2063 = vmatpush.msra.mxu2 %v1804_v1  ;;  %v1900_v63 = vld [vmem:[%s2906_s29 + $0x3d0] sm:$0xff]  ;;  %v1853_v0 = vld [vmem:[%s2906_s29 + $0x258] sm:$0xff] }
 0x8b0   : > { %2084 = vmatpush.msrb.mxu0 %v1819_v2  ;;  %2104 = vmatpush.msrb.mxu1 %v1835_v3  ;;  %v1869_v1 = vld [vmem:[%s2906_s29 + $0x2d8] sm:$0xff]  ;;  %v1883_v2 = vld [vmem:[%s2906_s29 + $0x348] sm:$0xff] }
 0x8b1   : > { %2044 = vmatpush.msra.mxu3 %v1787_v4  ;;  %2064 = vmatpush.msra.mxu2 %v1803_v5  ;;  %v1899_v3 = vld [vmem:[%s2906_s29 + $0x3c8] sm:$0xff]  ;;  %v1852_v4 = vld [vmem:[%s2906_s29 + $0x250] sm:$0xff] }
 0x8b2   : > { %2085 = vmatpush.msrb.mxu0 %v1818_v6  ;;  %2105 = vmatpush.msrb.mxu1 %v1834_v7  ;;  %v1868_v5 = vld [vmem:[%s2906_s29 + $0x2d0] sm:$0xff]  ;;  %v1882_v6 = vld [vmem:[%s2906_s29 + $0x340] sm:$0xff] }
 0x8b3   : > { %2045 = vmatpush.msra.mxu3 %v1786_v8  ;;  %2065 = vmatpush.msra.mxu2 %v1802_v9  ;;  %v1898_v7 = vld [vmem:[%s2906_s29 + $0x3c0] sm:$0xff]  ;;  %v1851_v8 = vld [vmem:[%s2906_s29 + $0x248] sm:$0xff] }
 0x8b4   : > { %2086 = vmatpush.msrb.mxu0 %v1817_v10  ;;  %2106 = vmatpush.msrb.mxu1 %v1833_v11  ;;  %v1867_v9 = vld [vmem:[%s2906_s29 + $0x2c8] sm:$0xff]  ;;  %v1881_v10 = vld [vmem:[%s2906_s29 + $0x338] sm:$0xff] }
 0x8b5   : > { %2046 = vmatpush.msra.mxu3 %v1785_v12  ;;  %2066 = vmatpush.msra.mxu2 %v1801_v13  ;;  %v1897_v11 = vld [vmem:[%s2906_s29 + $0x3b8] sm:$0xff]  ;;  %v1850_v12 = vld [vmem:[%s2906_s29 + $0x240] sm:$0xff] }
 0x8b6   : > { %2087 = vmatpush.msrb.mxu0 %v1816_v15  ;;  %2107 = vmatpush.msrb.mxu1 %v1832_v16  ;;  %v1866_v13 = vld [vmem:[%s2906_s29 + $0x2c0] sm:$0xff]  ;;  %v1880_v15 = vld [vmem:[%s2906_s29 + $0x330] sm:$0xff] }
 0x8b7   : > { %2047 = vmatpush.msra.mxu3 %v1784_v17  ;;  %2067 = vmatpush.msra.mxu2 %v1800_v18  ;;  %v1896_v16 = vld [vmem:[%s2906_s29 + $0x3b0] sm:$0xff]  ;;  %v1849_v17 = vld [vmem:[%s2906_s29 + $0x238] sm:$0xff] }
 0x8b8   : > { %2088 = vmatpush.msrb.mxu0 %v1815_v19  ;;  %2108 = vmatpush.msrb.mxu1 %v1831_v20  ;;  %v1865_v18 = vld [vmem:[%s2906_s29 + $0x2b8] sm:$0xff]  ;;  %v1879_v19 = vld [vmem:[%s2906_s29 + $0x328] sm:$0xff] }
 0x8b9   : > { %2048 = vmatpush.msra.mxu3 %v1783_v14  ;;  %2068 = vmatpush.msra.mxu2 %v1799_v21  ;;  %v1895_v20 = vld [vmem:[%s2906_s29 + $0x3a8] sm:$0xff]  ;;  %v1848_v14 = vld [vmem:[%s2906_s29 + $0x230] sm:$0xff] }
 0x8ba   : > { %2089 = vmatpush.msrb.mxu0 %v1814_v23  ;;  %2109 = vmatpush.msrb.mxu1 %v1830_v24  ;;  %v1864_v21 = vld [vmem:[%s2906_s29 + $0x2b0] sm:$0xff]  ;;  %v1878_v23 = vld [vmem:[%s2906_s29 + $0x320] sm:$0xff] }
 0x8bb   : > { %2049 = vmatpush.msra.mxu3 %v1782_v26  ;;  %2069 = vmatpush.msra.mxu2 %v1798_v27  ;;  %v1894_v24 = vld [vmem:[%s2906_s29 + $0x3a0] sm:$0xff]  ;;  %v1877_v26 = vld [vmem:[%s2906_s29 + $0x318] sm:$0xff] }
 0x8bc   : > { %2090 = vmatpush.msrb.mxu0 %v1813_v28  ;;  %2110 = vmatpush.msrb.mxu1 %v1829_v29  ;;  %v1893_v27 = vld [vmem:[%s2906_s29 + $0x398] sm:$0xff]  ;;  %v1847_v28 = vld [vmem:[%s2906_s29 + $0x228] sm:$0xff] }
 0x8bd   : > { %2050 = vmatpush.msra.mxu3 %v1781_v30  ;;  %2070 = vmatpush.msra.mxu2 %v1797_v31  ;;  %v1863_v29 = vld [vmem:[%s2906_s29 + $0x2a8] sm:$0xff]  ;;  %v1876_v30 = vld [vmem:[%s2906_s29 + $0x310] sm:$0xff] }
 0x8be   : > { %2091 = vmatpush.msrb.mxu0 %v1812_v32  ;;  %2111 = vmatpush.msrb.mxu1 %v1828_v33  ;;  %v1892_v31 = vld [vmem:[%s2906_s29 + $0x390] sm:$0xff]  ;;  %v1846_v32 = vld [vmem:[%s2906_s29 + $0x220] sm:$0xff] }
 0x8bf   : > { %2051 = vmatpush.msra.mxu3 %v1780_v34  ;;  %2071 = vmatpush.msra.mxu2 %v1796_v35  ;;  %v1862_v33 = vld [vmem:[%s2906_s29 + $0x2a0] sm:$0xff]  ;;  %v1875_v34 = vld [vmem:[%s2906_s29 + $0x308] sm:$0xff] }
 0x8c0   : > { %2092 = vmatpush.msrb.mxu0 %v1811_v36  ;;  %2112 = vmatpush.msrb.mxu1 %v1827_v37  ;;  %v1891_v35 = vld [vmem:[%s2906_s29 + $0x388] sm:$0xff]  ;;  %v1845_v36 = vld [vmem:[%s2906_s29 + $0x218] sm:$0xff] }
 0x8c1   : > { %2052 = vmatpush.msra.mxu3 %v1779_v39  ;;  %2072 = vmatpush.msra.mxu2 %v1795_v40  ;;  %v1861_v37 = vld [vmem:[%s2906_s29 + $0x298] sm:$0xff]  ;;  %v1874_v39 = vld [vmem:[%s2906_s29 + $0x300] sm:$0xff] }
 0x8c2   : > { %2093 = vmatpush.msrb.mxu0 %v1810_v42  ;;  %2113 = vmatpush.msrb.mxu1 %v1826_v43  ;;  %v1890_v40 = vld [vmem:[%s2906_s29 + $0x380] sm:$0xff]  ;;  %v1844_v42 = vld [vmem:[%s2906_s29 + $0x210] sm:$0xff] }
 0x8c3   : > { %2053 = vmatpush.msra.mxu3 %v1778_v25  ;;  %2073 = vmatpush.msra.mxu2 %v1794_v46  ;;  %v1860_v43 = vld [vmem:[%s2906_s29 + $0x290] sm:$0xff]  ;;  %v1842_v25 = vld [vmem:[%s2906_s29 + $0x200] sm:$0xff] }
 0x8c4   : > { %2158 = vmatpush.msra.mxu0 %v1889_v44  ;;  %2178 = vmatpush.msra.mxu1 %v1905_v45  ;;  %v1843_v44 = vld [vmem:[%s2906_s29 + $0x208] sm:$0xff]  ;;  %v1858_v46 = vld [vmem:[%s2906_s29 + $0x280] sm:$0xff] }
 0x8c5   : > { %2118 = vmatpush.msrb.mxu3 %v1857_v49  ;;  %2138 = vmatpush.msrb.mxu2 %v1873_v50  ;;  %v1859_v45 = vld [vmem:[%s2906_s29 + $0x288] sm:$0xff] }
 0x8c6   : > { %2159 = vmatpush.msra.mxu0 %v1888_v47  ;;  %2179 = vmatpush.msra.mxu1 %v1904_v48  ;;  %v3331_v47 = vld [vmem:[%s2900_s17] sm:$0xff] }
 0x8c7   : > { %2119 = vmatpush.msrb.mxu3 %v1856_v53  ;;  %2139 = vmatpush.msrb.mxu2 %v1872_v54  ;;  %v1409_v48 = vperm.slane %v3331_v47, 2  ;;  %v1410_v49 = vperm.slane %v3331_v47, 3  ;;  %v1407_v54 = vperm.slane %v3331_v47, 0 }
 0x8c8   : > { %2160 = vmatpush.msra.mxu0 %v1887_v51  ;;  %2180 = vmatpush.msra.mxu1 %v1903_v52 }
 0x8c9   : > { %2120 = vmatpush.msrb.mxu3 %v1855_v57  ;;  %2140 = vmatpush.msrb.mxu2 %v1871_v58  ;;  %v1953_v58 = vld [vmem:[%s2906_s29 + $0x578] sm:$0xff] }
 0x8ca   : > { %2161 = vmatpush.msra.mxu0 %v1886_v55  ;;  %2181 = vmatpush.msra.mxu1 %v1902_v56  ;;  %v1408_v55 = vperm.slane %v3331_v47, 1 }
 0x8cb   : > { %2121 = vmatpush.msrb.mxu3 %v1854_v60  ;;  %2141 = vmatpush.msrb.mxu2 %v1870_v61  ;;  %v1952_v61 = vld [vmem:[%s2906_s29 + $0x570] sm:$0xff] }
 0x8cc   : > { %2162 = vmatpush.msra.mxu0 %v1885_v38  ;;  %2182 = vmatpush.msra.mxu1 %v1901_v59  ;;  %v1969_v38 = vld [vmem:[%s2906_s29 + $0x5f8] sm:$0xff] }
 0x8cd   : > { %2122 = vmatpush.msrb.mxu3 %v1853_v0  ;;  %2142 = vmatpush.msrb.mxu2 %v1869_v1  ;;  %v1413_v1 = vperm.slane %v3331_v47, 6 }
 0x8ce   : > { %2163 = vmatpush.msra.mxu0 %v1884_v62  ;;  %2183 = vmatpush.msra.mxu1 %v1900_v63  ;;  %v1968_v62 = vld [vmem:[%s2906_s29 + $0x5f0] sm:$0xff] }
 0x8cf   : > { %2123 = vmatpush.msrb.mxu3 %v1852_v4  ;;  %2143 = vmatpush.msrb.mxu2 %v1868_v5  ;;  %v1967_v4 = vld [vmem:[%s2906_s29 + $0x5e8] sm:$0xff] }
 0x8d0   : > { %2164 = vmatpush.msra.mxu0 %v1883_v2  ;;  %2184 = vmatpush.msra.mxu1 %v1899_v3  ;;  %v1414_v2 = vperm.slane %v3331_v47, 7  ;;  %v1951_v3 = vld [vmem:[%s2906_s29 + $0x568] sm:$0xff] }
 0x8d1   : > { %2124 = vmatpush.msrb.mxu3 %v1851_v8  ;;  %2144 = vmatpush.msrb.mxu2 %v1867_v9  ;;  %v1937_v8 = vld [vmem:[%s2906_s29 + $0x4f8] sm:$0xff] }
 0x8d2   : > { %2165 = vmatpush.msra.mxu0 %v1882_v6  ;;  %2185 = vmatpush.msra.mxu1 %v1898_v7  ;;  %v1921_v7 = vld [vmem:[%s2906_s29 + $0x478] sm:$0xff] }
 0x8d3   : > { %2125 = vmatpush.msrb.mxu3 %v1850_v12  ;;  %2145 = vmatpush.msrb.mxu2 %v1866_v13  ;;  %v1966_v12 = vld [vmem:[%s2906_s29 + $0x5e0] sm:$0xff] }
 0x8d4   : > { %2166 = vmatpush.msra.mxu0 %v1881_v10  ;;  %2186 = vmatpush.msra.mxu1 %v1897_v11  ;;  %v1950_v11 = vld [vmem:[%s2906_s29 + $0x560] sm:$0xff] }
 0x8d5   : > { %2126 = vmatpush.msrb.mxu3 %v1849_v17  ;;  %2146 = vmatpush.msrb.mxu2 %v1865_v18  ;;  %v1936_v17 = vld [vmem:[%s2906_s29 + $0x4f0] sm:$0xff]  ;;  %v1411_v18 = vperm.slane %v3331_v47, 4 }
 0x8d6   : > { %2167 = vmatpush.msra.mxu0 %v1880_v15  ;;  %2187 = vmatpush.msra.mxu1 %v1896_v16  ;;  %v1920_v16 = vld [vmem:[%s2906_s29 + $0x470] sm:$0xff] }
 0x8d7   : > { %2127 = vmatpush.msrb.mxu3 %v1848_v14  ;;  %2147 = vmatpush.msrb.mxu2 %v1864_v21  ;;  %v1949_v21 = vld [vmem:[%s2906_s29 + $0x558] sm:$0xff] }
 0x8d8   : > { %2168 = vmatpush.msra.mxu0 %v1879_v19  ;;  %2188 = vmatpush.msra.mxu1 %v1895_v20  ;;  %v1412_v19 = vperm.slane %v3331_v47, 5  ;;  %v1961_v47 = vld [vmem:[%s2906_s29 + $0x5b8] sm:$0xff] }
 0x8d9   : > { %2128 = vmatpush.msrb.mxu3 %v1847_v28  ;;  %2148 = vmatpush.msrb.mxu2 %v1863_v29  ;;  %v1948_v29 = vld [vmem:[%s2906_s29 + $0x550] sm:$0xff] }
 0x8da   : > { %2169 = vmatpush.msra.mxu0 %v1878_v23  ;;  %2189 = vmatpush.msra.mxu1 %v1894_v24  ;;  %v1965_v23 = vld [vmem:[%s2906_s29 + $0x5d8] sm:$0xff]  ;;  %v1919_v24 = vld [vmem:[%s2906_s29 + $0x468] sm:$0xff] }
 0x8db   : > { %2129 = vmatpush.msrb.mxu3 %v1846_v32  ;;  %2149 = vmatpush.msrb.mxu2 %v1862_v33  ;;  %v1918_v33 = vld [vmem:[%s2906_s29 + $0x460] sm:$0xff] }
 0x8dc   : > { %2170 = vmatpush.msra.mxu0 %v1877_v26  ;;  %2190 = vmatpush.msra.mxu1 %v1893_v27  ;;  %v1935_v26 = vld [vmem:[%s2906_s29 + $0x4e8] sm:$0xff] }
 0x8dd   : > { %2130 = vmatpush.msrb.mxu3 %v1845_v36  ;;  %2150 = vmatpush.msrb.mxu2 %v1861_v37  ;;  %v1963_v36 = vld [vmem:[%s2906_s29 + $0x5c8] sm:$0xff] }
 0x8de   : > { %2171 = vmatpush.msra.mxu0 %v1876_v30  ;;  %2191 = vmatpush.msra.mxu1 %v1892_v31  ;;  %v1964_v30 = vld [vmem:[%s2906_s29 + $0x5d0] sm:$0xff] }
 0x8df   : > { %2131 = vmatpush.msrb.mxu3 %v1844_v42  ;;  %2151 = vmatpush.msrb.mxu2 %v1860_v43  ;;  %v1933_v42 = vld [vmem:[%s2906_s29 + $0x4d8] sm:$0xff]  ;;  %v1946_v43 = vld [vmem:[%s2906_s29 + $0x540] sm:$0xff] }
 0x8e0   : > { %2172 = vmatpush.msra.mxu0 %v1875_v34  ;;  %2192 = vmatpush.msra.mxu1 %v1891_v35  ;;  %v1934_v34 = vld [vmem:[%s2906_s29 + $0x4e0] sm:$0xff]  ;;  %v1947_v35 = vld [vmem:[%s2906_s29 + $0x548] sm:$0xff] }
 0x8e1   : > { %2132 = vmatpush.msrb.mxu3 %v1843_v44  ;;  %2152 = vmatpush.msrb.mxu2 %v1859_v45  ;;  %v1962_v44 = vld [vmem:[%s2906_s29 + $0x5c0] sm:$0xff]  ;;  %v1916_v45 = vld [vmem:[%s2906_s29 + $0x450] sm:$0xff] }
 0x8e2   : > { %2173 = vmatpush.msra.mxu0 %v1874_v39  ;;  %2193 = vmatpush.msra.mxu1 %v1890_v40  ;;  %v1917_v40 = vld [vmem:[%s2906_s29 + $0x458] sm:$0xff] }
 0x8e3   : > { %2133 = vmatpush.msrb.mxu3 %v1842_v25  ;;  %2153 = vmatpush.msrb.mxu2 %v1858_v46  ;;  %v1932_v25 = vld [vmem:[%s2906_s29 + $0x4d0] sm:$0xff]  ;;  %v1945_v46 = vld [vmem:[%s2906_s29 + $0x538] sm:$0xff] }
 0x8fa   : > { %v1499_v50 = vpop.f32.mrf.mxu0  ;;  %v1519_v51 = vpop.f32.mrf.mxu1 }
 0x8fb   : > { %v1500_v52 = vadd.f32 %v1499_v50, %v1409_v48  ;;  %v1520_v53 = vadd.f32 %v1519_v51, %v1410_v49  ;;  %v1915_v48 = vld [vmem:[%s2906_s29 + $0x448] sm:$0xff]  ;;  %v1944_v50 = vld [vmem:[%s2906_s29 + $0x530] sm:$0xff] }
 0x8fc   : > { %v1931_v49 = vld [vmem:[%s2906_s29 + $0x4c8] sm:$0xff]  ;;  %v1960_v51 = vld [vmem:[%s2906_s29 + $0x5b0] sm:$0xff] }
 0x8fd   : > { %v1764_v56 = vmax.f32 %v1500_v52, 0.0  ;;  %v1765_v57 = vmax.f32 %v1520_v53, 0.0  ;;  %v1914_v52 = vld [vmem:[%s2906_s29 + $0x440] sm:$0xff] }
 0x8fe   : > { %v1930_v53 = vld [vmem:[%s2906_s29 + $0x4c0] sm:$0xff] }
 0x8ff   : > { %2094 = vmatmul.f32.vlgmr.msrb.gmra.mxu0 %v1764_v56  ;;  %2114 = vmatmul.f32.vlgmr.msrb.gmra.mxu1 %v1765_v57  ;;  %v1459_v59 = vpop.f32.mrf.mxu3  ;;  %v1479_v60 = vpop.f32.mrf.mxu2  ;;  %v3380_v56 = vld [vmem:[%s2900_s17 + $0x8] sm:$0xff]  ;;  %v1913_v57 = vld [vmem:[%s2906_s29 + $0x438] sm:$0xff] }
 0x900   : > { %2238 = vmatpush.msrb.mxu0 %v1953_v58  ;;  %2258 = vmatpush.msrb.mxu1 %v1969_v38  ;;  %v1460_v63 = vadd.f32 %v1459_v59, %v1407_v54  ;;  %v1480_v0 = vadd.f32 %v1479_v60, %v1408_v55  ;;  %v1943_v54 = vld [vmem:[%s2906_s29 + $0x528] sm:$0xff]  ;;  %v1929_v58 = vld [vmem:[%s2906_s29 + $0x4b8] sm:$0xff]  ;;  %v1942_v38 = vld [vmem:[%s2906_s29 + $0x520] sm:$0xff] }
 0x901   : > { %v1959_v55 = vld [vmem:[%s2906_s29 + $0x5a8] sm:$0xff]  ;;  %v1958_v59 = vld [vmem:[%s2906_s29 + $0x5a0] sm:$0xff]  ;;  %v1912_v60 = vld [vmem:[%s2906_s29 + $0x430] sm:$0xff] }
 0x902   : > { %v1762_v5 = vmax.f32 %v1460_v63, 0.0  ;;  %v1763_v6 = vmax.f32 %v1480_v0, 0.0  ;;  %2239 = vmatpush.msrb.mxu0 %v1952_v61  ;;  %2259 = vmatpush.msrb.mxu1 %v1968_v62  ;;  %v1928_v61 = vld [vmem:[%s2906_s29 + $0x4b0] sm:$0xff]  ;;  %v1417_v62 = vperm.slane %v3380_v56, 2  ;;  %v1418_v63 = vperm.slane %v3380_v56, 3  ;;  %v1941_v0 = vld [vmem:[%s2906_s29 + $0x518] sm:$0xff] }
 0x904   : > { %v1579_v9 = vpop.f32.mrf.mxu0  ;;  %v1599_v10 = vpop.f32.mrf.mxu1  ;;  %2240 = vmatpush.msrb.mxu0 %v1951_v3  ;;  %2260 = vmatpush.msrb.mxu1 %v1967_v4  ;;  %v1911_v4 = vld [vmem:[%s2906_s29 + $0x428] sm:$0xff] }
 0x905   : > { %v1580_v13 = vadd.f32 %v1579_v9, %v1413_v1  ;;  %v1600_v15 = vadd.f32 %v1599_v10, %v1414_v2  ;;  %2054 = vmatmul.f32.vlgmr.msra.gmra.mxu3 %v1762_v5  ;;  %2074 = vmatmul.f32.vlgmr.msra.gmra.mxu2 %v1763_v6  ;;  %v1957_v1 = vld [vmem:[%s2906_s29 + $0x598] sm:$0xff]  ;;  %v1927_v5 = vld [vmem:[%s2906_s29 + $0x4a8] sm:$0xff]  ;;  %v1940_v6 = vld [vmem:[%s2906_s29 + $0x510] sm:$0xff] }
 0x906   : > { %2198 = vmatpush.msra.mxu3 %v1921_v7  ;;  %2218 = vmatpush.msra.mxu2 %v1937_v8  ;;  %v1956_v7 = vld [vmem:[%s2906_s29 + $0x590] sm:$0xff]  ;;  %v1910_v8 = vld [vmem:[%s2906_s29 + $0x420] sm:$0xff] }
 0x907   : > { %v1768_v20 = vmax.f32 %v1580_v13, 0.0  ;;  %v1769_v14 = vmax.f32 %v1600_v15, 0.0  ;;  %2241 = vmatpush.msrb.mxu0 %v1950_v11  ;;  %2261 = vmatpush.msrb.mxu1 %v1966_v12  ;;  %v1926_v9 = vld [vmem:[%s2906_s29 + $0x4a0] sm:$0xff]  ;;  %v1939_v12 = vld [vmem:[%s2906_s29 + $0x508] sm:$0xff]  ;;  %v1909_v15 = vld [vmem:[%s2906_s29 + $0x418] sm:$0xff] }
 0x908   : > { %2199 = vmatpush.msra.mxu3 %v1920_v16  ;;  %2219 = vmatpush.msra.mxu2 %v1936_v17  ;;  %v1955_v13 = vld [vmem:[%s2906_s29 + $0x588] sm:$0xff]  ;;  %v1925_v16 = vld [vmem:[%s2906_s29 + $0x498] sm:$0xff]  ;;  %v1938_v17 = vld [vmem:[%s2906_s29 + $0x500] sm:$0xff] }
 0x909   : > { %2174 = vmatmul.f32.vlgmr.msra.gmra.mxu0 %v1768_v20  ;;  %2194 = vmatmul.f32.vlgmr.msra.gmra.mxu1 %v1769_v14  ;;  %v1539_v27 = vpop.f32.mrf.mxu3  ;;  %v1559_v28 = vpop.f32.mrf.mxu2  ;;  %v1416_v20 = vperm.slane %v3380_v56, 1 }
 0x90a   : > { %2242 = vmatpush.msrb.mxu0 %v1949_v21  ;;  %2262 = vmatpush.msrb.mxu1 %v1965_v23  ;;  %v1540_v31 = vadd.f32 %v1539_v27, %v1411_v18  ;;  %v1560_v32 = vadd.f32 %v1559_v28, %v1412_v19  ;;  %v1954_v18 = vld [vmem:[%s2906_s29 + $0x580] sm:$0xff]  ;;  %v1415_v19 = vperm.slane %v3380_v56, 0  ;;  %v2033_v27 = vld [vmem:[%s2906_s29 + $0x7f8] sm:$0xff]  ;;  %v1908_v28 = vld [vmem:[%s2906_s29 + $0x410] sm:$0xff] }
 0x90b   : > { %2200 = vmatpush.msra.mxu3 %v1919_v24  ;;  %2220 = vmatpush.msra.mxu2 %v1935_v26  ;;  %v2017_v26 = vld [vmem:[%s2906_s29 + $0x778] sm:$0xff] }
 0x90c   : > { %v1766_v37 = vmax.f32 %v1540_v31, 0.0  ;;  %v1767_v39 = vmax.f32 %v1560_v32, 0.0  ;;  %2243 = vmatpush.msrb.mxu0 %v1948_v29  ;;  %2263 = vmatpush.msrb.mxu1 %v1964_v30  ;;  %v1924_v29 = vld [vmem:[%s2906_s29 + $0x490] sm:$0xff] }
 0x90d   : > { %2201 = vmatpush.msra.mxu3 %v1918_v33  ;;  %2221 = vmatpush.msra.mxu2 %v1934_v34  ;;  %v2016_v30 = vld [vmem:[%s2906_s29 + $0x770] sm:$0xff]  ;;  %v1907_v34 = vld [vmem:[%s2906_s29 + $0x408] sm:$0xff] }
 0x90e   : > { %2244 = vmatpush.msrb.mxu0 %v1947_v35  ;;  %2264 = vmatpush.msrb.mxu1 %v1963_v36  ;;  %v2032_v31 = vld [vmem:[%s2906_s29 + $0x7f0] sm:$0xff]  ;;  %v1923_v35 = vld [vmem:[%s2906_s29 + $0x488] sm:$0xff] }
 0x90f   : > { %2134 = vmatmul.f32.vlgmr.msrb.gmra.mxu3 %v1766_v37  ;;  %2154 = vmatmul.f32.vlgmr.msrb.gmra.mxu2 %v1767_v39  ;;  %v2015_v36 = vld [vmem:[%s2906_s29 + $0x768] sm:$0xff]  ;;  %v1906_v39 = vld [vmem:[%s2906_s29 + $0x400] sm:$0xff] }
 0x910   : > { %2202 = vmatpush.msra.mxu3 %v1917_v40  ;;  %2222 = vmatpush.msra.mxu2 %v1933_v42  ;;  %v1659_v2 = vpop.f32.mrf.mxu0  ;;  %v1679_v3 = vpop.f32.mrf.mxu1  ;;  %v2031_v37 = vld [vmem:[%s2906_s29 + $0x7e8] sm:$0xff]  ;;  %v1922_v40 = vld [vmem:[%s2906_s29 + $0x480] sm:$0xff] }
 0x911   : > { %2245 = vmatpush.msrb.mxu0 %v1946_v43  ;;  %2265 = vmatpush.msrb.mxu1 %v1962_v44  ;;  %v1660_v10 = vadd.f32 %v1659_v2, %v1417_v62  ;;  %v1680_v11 = vadd.f32 %v1679_v3, %v1418_v63  ;;  %v1985_v44 = vld [vmem:[%s2906_s29 + $0x678] sm:$0xff]  ;;  %v2026_v62 = vld [vmem:[%s2906_s29 + $0x7c0] sm:$0xff]  ;;  %v1980_v63 = vld [vmem:[%s2906_s29 + $0x650] sm:$0xff] }
 0x912   : > { %2203 = vmatpush.msra.mxu3 %v1916_v45  ;;  %2223 = vmatpush.msra.mxu2 %v1932_v25  ;;  %v2001_v45 = vld [vmem:[%s2906_s29 + $0x6f8] sm:$0xff]  ;;  %v2014_v25 = vld [vmem:[%s2906_s29 + $0x760] sm:$0xff]  ;;  %v1979_v3 = vld [vmem:[%s2906_s29 + $0x648] sm:$0xff] }
 0x913   : > { %2246 = vmatpush.msrb.mxu0 %v1945_v46  ;;  %2266 = vmatpush.msrb.mxu1 %v1961_v47  ;;  %v1772_v14 = vmax.f32 %v1660_v10, 0.0  ;;  %v1773_v21 = vmax.f32 %v1680_v11, 0.0  ;;  %v2030_v46 = vld [vmem:[%s2906_s29 + $0x7e0] sm:$0xff]  ;;  %v1984_v47 = vld [vmem:[%s2906_s29 + $0x670] sm:$0xff]  ;;  %v2025_v2 = vld [vmem:[%s2906_s29 + $0x7b8] sm:$0xff] }
 0x914   : > { %2204 = vmatpush.msra.mxu3 %v1915_v48  ;;  %2224 = vmatpush.msra.mxu2 %v1931_v49  ;;  %v2000_v48 = vld [vmem:[%s2906_s29 + $0x6f0] sm:$0xff]  ;;  %v2013_v49 = vld [vmem:[%s2906_s29 + $0x758] sm:$0xff]  ;;  %v2023_v10 = vld [vmem:[%s2906_s29 + $0x7a8] sm:$0xff] }
 0x915   : > { %2247 = vmatpush.msrb.mxu0 %v1944_v50  ;;  %2267 = vmatpush.msrb.mxu1 %v1960_v51  ;;  %v1619_v23 = vpop.f32.mrf.mxu3  ;;  %v1639_v24 = vpop.f32.mrf.mxu2  ;;  %v2029_v50 = vld [vmem:[%s2906_s29 + $0x7d8] sm:$0xff]  ;;  %v1983_v51 = vld [vmem:[%s2906_s29 + $0x668] sm:$0xff] }
 0x916   : > { %2205 = vmatpush.msra.mxu3 %v1914_v52  ;;  %2225 = vmatpush.msra.mxu2 %v1930_v53  ;;  %v1620_v32 = vadd.f32 %v1619_v23, %v1415_v19  ;;  %v1640_v33 = vadd.f32 %v1639_v24, %v1416_v20  ;;  %v1999_v52 = vld [vmem:[%s2906_s29 + $0x6e8] sm:$0xff]  ;;  %v2012_v53 = vld [vmem:[%s2906_s29 + $0x750] sm:$0xff]  ;;  %v1977_v11 = vld [vmem:[%s2906_s29 + $0x638] sm:$0xff]  ;;  %v1422_v19 = vperm.slane %v3380_v56, 7 }
 0x917   : > { %2248 = vmatpush.msrb.mxu0 %v1943_v54  ;;  %2268 = vmatpush.msrb.mxu1 %v1959_v55  ;;  %v2028_v54 = vld [vmem:[%s2906_s29 + $0x7d0] sm:$0xff]  ;;  %v1982_v55 = vld [vmem:[%s2906_s29 + $0x660] sm:$0xff]  ;;  %v2005_v20 = vld [vmem:[%s2906_s29 + $0x718] sm:$0xff] }
 0x918   : > { %2206 = vmatpush.msra.mxu3 %v1913_v57  ;;  %2226 = vmatpush.msra.mxu2 %v1929_v58  ;;  %v1770_v42 = vmax.f32 %v1620_v32, 0.0  ;;  %v1771_v43 = vmax.f32 %v1640_v33, 0.0  ;;  %v1998_v57 = vld [vmem:[%s2906_s29 + $0x6e0] sm:$0xff]  ;;  %v2011_v58 = vld [vmem:[%s2906_s29 + $0x748] sm:$0xff] }
 0x919   : > { %2249 = vmatpush.msrb.mxu0 %v1942_v38  ;;  %2269 = vmatpush.msrb.mxu1 %v1958_v59  ;;  %v2027_v38 = vld [vmem:[%s2906_s29 + $0x7c8] sm:$0xff]  ;;  %v1981_v59 = vld [vmem:[%s2906_s29 + $0x658] sm:$0xff] }
 0x91a   : > { %2207 = vmatpush.msra.mxu3 %v1912_v60  ;;  %2227 = vmatpush.msra.mxu2 %v1928_v61  ;;  %v1997_v60 = vld [vmem:[%s2906_s29 + $0x6d8] sm:$0xff]  ;;  %v2010_v61 = vld [vmem:[%s2906_s29 + $0x740] sm:$0xff]  ;;  %v1975_v24 = vld [vmem:[%s2906_s29 + $0x628] sm:$0xff] }
 0x91b   : > { %2250 = vmatpush.msrb.mxu0 %v1941_v0  ;;  %2270 = vmatpush.msrb.mxu1 %v1957_v1  ;;  %v1996_v0 = vld [vmem:[%s2906_s29 + $0x6d0] sm:$0xff]  ;;  %v2009_v1 = vld [vmem:[%s2906_s29 + $0x738] sm:$0xff]  ;;  %v2003_v33 = vld [vmem:[%s2906_s29 + $0x708] sm:$0xff] }
 0x91c   : > { %2208 = vmatpush.msra.mxu3 %v1911_v4  ;;  %2228 = vmatpush.msra.mxu2 %v1927_v5  ;;  %v1995_v4 = vld [vmem:[%s2906_s29 + $0x6c8] sm:$0xff]  ;;  %v2008_v5 = vld [vmem:[%s2906_s29 + $0x730] sm:$0xff] }
 0x91d   : > { %2251 = vmatpush.msrb.mxu0 %v1940_v6  ;;  %2271 = vmatpush.msrb.mxu1 %v1956_v7  ;;  %v2024_v6 = vld [vmem:[%s2906_s29 + $0x7b0] sm:$0xff]  ;;  %v1978_v7 = vld [vmem:[%s2906_s29 + $0x640] sm:$0xff] }
 0x91e   : > { %2209 = vmatpush.msra.mxu3 %v1910_v8  ;;  %2229 = vmatpush.msra.mxu2 %v1926_v9  ;;  %v1994_v8 = vld [vmem:[%s2906_s29 + $0x6c0] sm:$0xff]  ;;  %v2007_v9 = vld [vmem:[%s2906_s29 + $0x728] sm:$0xff] }
 0x91f   : > { %2252 = vmatpush.msrb.mxu0 %v1939_v12  ;;  %2272 = vmatpush.msrb.mxu1 %v1955_v13  ;;  %v1993_v12 = vld [vmem:[%s2906_s29 + $0x6b8] sm:$0xff]  ;;  %v2006_v13 = vld [vmem:[%s2906_s29 + $0x720] sm:$0xff] }
 0x920   : > { %2210 = vmatpush.msra.mxu3 %v1909_v15  ;;  %2230 = vmatpush.msra.mxu2 %v1925_v16  ;;  %v2022_v15 = vld [vmem:[%s2906_s29 + $0x7a0] sm:$0xff]  ;;  %v1976_v16 = vld [vmem:[%s2906_s29 + $0x630] sm:$0xff]  ;;  %v1759_v23 = vpop.f32.mrf.mxu1 }
 0x921   : > { %2253 = vmatpush.msrb.mxu0 %v1938_v17  ;;  %2273 = vmatpush.msrb.mxu1 %v1954_v18  ;;  %v1992_v17 = vld [vmem:[%s2906_s29 + $0x6b0] sm:$0xff]  ;;  %v1421_v18 = vperm.slane %v3380_v56, 6  ;;  %v1760_v32 = vadd.f32 %v1759_v23, %v1422_v19 }
 0x922   : > { %2254 = vmatmul.f32.vlgmr.msrb.gmra.mxu0 %v1772_v14  ;;  %2274 = vmatmul.f32.vlgmr.msrb.gmra.mxu1 %v1773_v21  ;;  %v2021_v14 = vld [vmem:[%s2906_s29 + $0x798] sm:$0xff]  ;;  %v1739_v21 = vpop.f32.mrf.mxu0 }
 0x923   : > { %2318 = vmatpush.msra.mxu0 %v2017_v26  ;;  %2338 = vmatpush.msra.mxu1 %v2033_v27  ;;  %v1991_v26 = vld [vmem:[%s2906_s29 + $0x6a8] sm:$0xff]  ;;  %v2004_v27 = vld [vmem:[%s2906_s29 + $0x710] sm:$0xff] }
 0x924   : > { %2211 = vmatpush.msra.mxu3 %v1908_v28  ;;  %2231 = vmatpush.msra.mxu2 %v1924_v29  ;;  %v2020_v28 = vld [vmem:[%s2906_s29 + $0x790] sm:$0xff]  ;;  %v1974_v29 = vld [vmem:[%s2906_s29 + $0x620] sm:$0xff] }
 0x925   : > { %2319 = vmatpush.msra.mxu0 %v2016_v30  ;;  %2339 = vmatpush.msra.mxu1 %v2032_v31  ;;  %v1990_v30 = vld [vmem:[%s2906_s29 + $0x6a0] sm:$0xff]  ;;  %v1740_v31 = vadd.f32 %v1739_v21, %v1421_v18 }
 0x926   : > { %2212 = vmatpush.msra.mxu3 %v1907_v34  ;;  %2232 = vmatpush.msra.mxu2 %v1923_v35  ;;  %v2019_v34 = vld [vmem:[%s2906_s29 + $0x788] sm:$0xff]  ;;  %v1973_v35 = vld [vmem:[%s2906_s29 + $0x618] sm:$0xff] }
 0x927   : > { %2320 = vmatpush.msra.mxu0 %v2015_v36  ;;  %2340 = vmatpush.msra.mxu1 %v2031_v37  ;;  %v1989_v36 = vld [vmem:[%s2906_s29 + $0x698] sm:$0xff]  ;;  %v1419_v37 = vperm.slane %v3380_v56, 4 }
 0x928   : > { %2213 = vmatpush.msra.mxu3 %v1906_v39  ;;  %2233 = vmatpush.msra.mxu2 %v1922_v40  ;;  %v1420_v39 = vperm.slane %v3380_v56, 5  ;;  %v2002_v40 = vld [vmem:[%s2906_s29 + $0x700] sm:$0xff] }
 0x929   : > { %2214 = vmatmul.f32.vlgmr.msra.gmra.mxu3 %v1770_v42  ;;  %2234 = vmatmul.f32.vlgmr.msra.gmra.mxu2 %v1771_v43  ;;  %v2018_v42 = vld [vmem:[%s2906_s29 + $0x780] sm:$0xff]  ;;  %v1699_v43 = vpop.f32.mrf.mxu3 }
 0x92a   : > { %2278 = vmatpush.msrb.mxu3 %v1985_v44  ;;  %2298 = vmatpush.msrb.mxu2 %v2001_v45  ;;  %v1719_v44 = vpop.f32.mrf.mxu2  ;;  %v1776_v45 = vmax.f32 %v1740_v31, 0.0  ;;  %v1700_v56 = vadd.f32 %v1699_v43, %v1419_v37  ;;  %v2682_v43 = vld [vmem:[%s709_s28] ss:$0 sm:$0xff] }
 0x92b   : > { %2321 = vmatpush.msra.mxu0 %v2014_v25  ;;  %2341 = vmatpush.msra.mxu1 %v2030_v46  ;;  %v1777_v25 = vmax.f32 %v1760_v32, 0.0  ;;  %v1972_v46 = vld [vmem:[%s2906_s29 + $0x610] sm:$0xff] }
 0x92c   : > { %2279 = vmatpush.msrb.mxu3 %v1984_v47  ;;  %2299 = vmatpush.msrb.mxu2 %v2000_v48  ;;  %v1988_v47 = vld [vmem:[%s2906_s29 + $0x690] sm:$0xff]  ;;  %v1720_v48 = vadd.f32 %v1719_v44, %v1420_v39 }
 0x92d   : > { %2322 = vmatpush.msra.mxu0 %v2013_v49  ;;  %2342 = vmatpush.msra.mxu1 %v2029_v50  ;;  %v1971_v49 = vld [vmem:[%s2906_s29 + $0x608] sm:$0xff] }
 0x92e   : > { %2280 = vmatpush.msrb.mxu3 %v1983_v51  ;;  %2300 = vmatpush.msrb.mxu2 %v1999_v52  ;;  %v1987_v50 = vld [vmem:[%s2906_s29 + $0x688] sm:$0xff]  ;;  %v1970_v51 = vld [vmem:[%s2906_s29 + $0x600] sm:$0xff] }
 0x92f   : > { %2323 = vmatpush.msra.mxu0 %v2012_v53  ;;  %2343 = vmatpush.msra.mxu1 %v2028_v54  ;;  %v1986_v52 = vld [vmem:[%s2906_s29 + $0x680] sm:$0xff]  ;;  %v1774_v53 = vmax.f32 %v1700_v56, 0.0  ;;  %v1775_v54 = vmax.f32 %v1720_v48, 0.0 }
 0x930   : > { %2281 = vmatpush.msrb.mxu3 %v1982_v55  ;;  %2301 = vmatpush.msrb.mxu2 %v1998_v57  ;;  %v2681_v55 = vld [vmem:[%s706_s18] ss:$0 sm:$0xff] }
 0x931   : > { %2324 = vmatpush.msra.mxu0 %v2011_v58  ;;  %2344 = vmatpush.msra.mxu1 %v2027_v38 }
 0x932   : > { %2282 = vmatpush.msrb.mxu3 %v1981_v59  ;;  %2302 = vmatpush.msrb.mxu2 %v1997_v60 }
 0x933   : > { %2325 = vmatpush.msra.mxu0 %v2010_v61  ;;  %2345 = vmatpush.msra.mxu1 %v2026_v62 }
 0x934   : > { %2283 = vmatpush.msrb.mxu3 %v1980_v63  ;;  %2303 = vmatpush.msrb.mxu2 %v1996_v0 }
 0x935   : > { %2326 = vmatpush.msra.mxu0 %v2009_v1  ;;  %2346 = vmatpush.msra.mxu1 %v2025_v2 }
 0x936   : > { %2284 = vmatpush.msrb.mxu3 %v1979_v3  ;;  %2304 = vmatpush.msrb.mxu2 %v1995_v4 }
 0x937   : > { %2327 = vmatpush.msra.mxu0 %v2008_v5  ;;  %2347 = vmatpush.msra.mxu1 %v2024_v6 }
 0x938   : > { %2285 = vmatpush.msrb.mxu3 %v1978_v7  ;;  %2305 = vmatpush.msrb.mxu2 %v1994_v8 }
 0x939   : > { %2328 = vmatpush.msra.mxu0 %v2007_v9  ;;  %2348 = vmatpush.msra.mxu1 %v2023_v10 }
 0x93a   : > { %2286 = vmatpush.msrb.mxu3 %v1977_v11  ;;  %2306 = vmatpush.msrb.mxu2 %v1993_v12 }
 0x93b   : > { %2329 = vmatpush.msra.mxu0 %v2006_v13  ;;  %2349 = vmatpush.msra.mxu1 %v2022_v15 }
 0x93c   : > { %2287 = vmatpush.msrb.mxu3 %v1976_v16  ;;  %2307 = vmatpush.msrb.mxu2 %v1992_v17 }
 0x93d   : > { %2330 = vmatpush.msra.mxu0 %v2005_v20  ;;  %2350 = vmatpush.msra.mxu1 %v2021_v14 }
 0x93e   : > { %2288 = vmatpush.msrb.mxu3 %v1975_v24  ;;  %2308 = vmatpush.msrb.mxu2 %v1991_v26 }
 0x93f   : > { %2331 = vmatpush.msra.mxu0 %v2004_v27  ;;  %2351 = vmatpush.msra.mxu1 %v2020_v28 }
 0x940   : > { %2289 = vmatpush.msrb.mxu3 %v1974_v29  ;;  %2309 = vmatpush.msrb.mxu2 %v1990_v30 }
 0x941   : > { %2332 = vmatpush.msra.mxu0 %v2003_v33  ;;  %2352 = vmatpush.msra.mxu1 %v2019_v34 }
 0x942   : > { %2290 = vmatpush.msrb.mxu3 %v1973_v35  ;;  %2310 = vmatpush.msrb.mxu2 %v1989_v36 }
 0x943   : > { %2333 = vmatpush.msra.mxu0 %v2002_v40  ;;  %2353 = vmatpush.msra.mxu1 %v2018_v42 }
 0x944   : > { %2334 = vmatmul.f32.vlgmr.msra.gmra.mxu0 %v1776_v45  ;;  %2354 = vmatmul.f32.vlgmr.msra.gmra.mxu1 %v1777_v25 }
 0x945   : > { %2291 = vmatpush.msrb.mxu3 %v1972_v46  ;;  %2311 = vmatpush.msrb.mxu2 %v1988_v47 }
 0x947   : > { %2292 = vmatpush.msrb.mxu3 %v1971_v49  ;;  %2312 = vmatpush.msrb.mxu2 %v1987_v50 }
 0x949   : > { %2293 = vmatpush.msrb.mxu3 %v1970_v51  ;;  %2313 = vmatpush.msrb.mxu2 %v1986_v52 }
 0x94a   : > { %2294 = vmatmul.f32.vlgmr.msrb.gmra.mxu3 %v1774_v53  ;;  %2314 = vmatmul.f32.vlgmr.msrb.gmra.mxu2 %v1775_v54 }
 0x97c   : > { %v2095_v60 = vpop.f32.mrf.mxu0  ;;  %v2115_v62 = vpop.f32.mrf.mxu1 }
 0x986   : > { %v2175_v4 = vpop.f32.mrf.mxu0  ;;  %v2195_v6 = vpop.f32.mrf.mxu1 }
 0x988   : > { %v2055_v57 = vpop.f32.mrf.mxu3  ;;  %v2075_v38 = vpop.f32.mrf.mxu2 }
 0x989   : > { %v2056_v58 = vadd.f32 %v2681_v55, %v2055_v57 }
 0x98b   : > { %v2076_v59 = vadd.f32 %v2075_v38, %v2056_v58 }
 0x98d   : > { %v2096_v61 = vadd.f32 %v2095_v60, %v2076_v59 }
 0x98f   : > { %v2116_v63 = vadd.f32 %v2115_v62, %v2096_v61 }
 0x992   : > { %v2135_v0 = vpop.f32.mrf.mxu3  ;;  %v2155_v2 = vpop.f32.mrf.mxu2 }
 0x993   : > { %v2136_v1 = vadd.f32 %v2135_v0, %v2116_v63 }
 0x995   : > { %v2156_v3 = vadd.f32 %v2155_v2, %v2136_v1 }
 0x997   : > { %v2176_v5 = vadd.f32 %v2175_v4, %v2156_v3 }
 0x999   : > { %v2196_v8 = vadd.f32 %v2195_v6, %v2176_v5 }
 0x99f   : > { %v2255_v12 = vpop.f32.mrf.mxu0  ;;  %v2275_v15 = vpop.f32.mrf.mxu1 }
 0x9ac   : > { %v2215_v7 = vpop.f32.mrf.mxu3  ;;  %v2235_v10 = vpop.f32.mrf.mxu2 }
 0x9ad   : > { %v2216_v9 = vadd.f32 %v2215_v7, %v2196_v8 }
 0x9af   : > { %v2236_v11 = vadd.f32 %v2235_v10, %v2216_v9 }
 0x9b1   : > { %v2256_v13 = vadd.f32 %v2255_v12, %v2236_v11 }
 0x9b3   : > { %v2276_v16 = vadd.f32 %v2275_v15, %v2256_v13 }
 0x9c1   : > { %v2335_v14 = vpop.f32.mrf.mxu0  ;;  %v2355_v23 = vpop.f32.mrf.mxu1 }
 0x9cd   : > { %v2295_v17 = vpop.f32.mrf.mxu3  ;;  %v2315_v19 = vpop.f32.mrf.mxu2 }
 0x9ce   : > { %v2296_v18 = vadd.f32 %v2295_v17, %v2276_v16 }
 0x9d0   : > { %v2316_v20 = vadd.f32 %v2315_v19, %v2296_v18 }
 0x9d2   : > { %v2336_v21 = vadd.f32 %v2335_v14, %v2316_v20 }
 0x9d4   : > { %v2356_v24 = vadd.f32 %v2355_v23, %v2336_v21 }
 0x9d6   : > { %v2358_v26 = vadd.f32 %v2356_v24, %v3104_v41 }
 0x9d8   : > { %v2361_v27 = vsel %vm773_vm2, %v2358_v26, 0.0 }
 0x9d9   : > { %2362 = vadd.xlane.f32.xlu0 %v2361_v27 }
 0xa4c   : > { %v2363_v28 = vpop.xlane.xlu0 %2362 }
 0xa4d   : > { %v2364_v29 = vmul.f32 %v2363_v28, %v3024_v22 }
 0xa4f   : > { %v2365_v30 = vsub.f32 %v2358_v26, %v2364_v29 }
 0xa51   : > { %v2366_v31 = vmul.f32 %v2365_v30, %v2365_v30 }
 0xa53   : > { %v2367_v32 = vsel %vm773_vm2, %v2366_v31, 0.0 }
 0xa54   : > { %2368 = vadd.xlane.f32.xlu1 %v2367_v32 }
 0xac7   : > { %v2369_v33 = vpop.xlane.xlu1 %2368 }
 0xac8   : > { %v2370_v34 = vmul.f32 %v2369_v33, %v3024_v22  ;;  %v2683_v22 = vld [vmem:[%s712_s23] ss:$0 sm:$0xff] }
 0xaca   : > { %v2371_v35 = vadd.f32 1e-05, %v2370_v34 }
 0xacc   : > { %2704 = vrsqrt.f32 %v2371_v35  ;;  %vm2378_vm11 = vweird.f32 %v2371_v35 }
 0xad2   : > { %v2705_v36 = vpop.eup %2704 }
 0xad3   : > { %v2373_v41 = vmul.f32 %v2705_v36, %v2371_v35  ;;  %vm2379_vm10 = vweird.f32 %v2705_v36 }
 0xad4   : > { %vm2380_vm12 = vmor %vm2378_vm11, %vm2379_vm10 }
 0xad5   : > { %v2374_v37 = vmul.f32 %v2705_v36, %v2373_v41 }
 0xad7   : > { %v2375_v39 = vmul.f32 0.5, %v2374_v37 }
 0xad9   : > { %v2376_v40 = vsub.f32 1.5, %v2375_v39 }
 0xadb   : > { %v2377_v42 = vmul.f32 %v2705_v36, %v2376_v40 }
 0xadd   : > { %v2381_v44 = vsel %vm2380_vm12, %v2705_v36, %v2377_v42 }
 0xade   : > { %v2382_v45 = vmul.f32 %v2381_v44, %v2365_v30 }
 0xae0   : > { %v2386_v25 = vmul.f32 %v2682_v43, %v2382_v45  ;;  %2395 = sbr.rel (%p2644_p5) target bundleno = 2934 (0xb76), region = 96 }
 0xae2   : > { %v2390_v46 = vadd.f32 %v2683_v22, %v2386_v25 }
 0xae4   : > { %2391 = vst.msk [vmem:[#allocation2] sm:$0xff] %vm773_vm2, %v2390_v46 }
 0xae5   : > { %v2403_v47 = vld [vmem:[%s3577_s5 + $0x38] sm:$0xff]  ;;  %v2402_v56 = vld [vmem:[%s3577_s5 + $0x30] sm:$0xff]  ;;  %v2401_v48 = vld [vmem:[%s3577_s5 + $0x28] sm:$0xff] }
 0xae6   : > { %2419 = vmatpush.msra.mxu0 %v2403_v47  ;;  %v2400_v49 = vld [vmem:[%s3577_s5 + $0x20] sm:$0xff]  ;;  %v2399_v50 = vld [vmem:[%s3577_s5 + $0x18] sm:$0xff]  ;;  %v2398_v51 = vld [vmem:[%s3577_s5 + $0x10] sm:$0xff] }
 0xae7   : > { %v2397_v52 = vld [vmem:[%s3577_s5 + $0x8] sm:$0xff]  ;;  %v2396_v53 = vld [vmem:[%s3577_s5] sm:$0xff] }
 0xae8   : > { %2420 = vmatpush.msra.mxu0 %v2402_v56  ;;  %v2706_v54 = vld [vmem:[%s3578_s0] ss:$0 sm:$0xff] }
 0xaea   : > { %2421 = vmatpush.msra.mxu0 %v2401_v48 }
 0xaec   : > { %2422 = vmatpush.msra.mxu0 %v2400_v49 }
 0xaee   : > { %2423 = vmatpush.msra.mxu0 %v2399_v50 }
 0xaf0   : > { %2424 = vmatpush.msra.mxu0 %v2398_v51 }
 0xaf2   : > { %2425 = vmatpush.msra.mxu0 %v2397_v52 }
 0xaf4   : > { %2426 = vmatpush.msra.mxu0 %v2396_v53 }
 0xaf5   : > { %2645 = vmatmul.msk.f32.vlgmr.msra.gmra.mxu0 %vm773_vm2, %v2390_v46 }
 0xb72   : > { %v2428_v55 = vpop.f32.mrf.mxu0 }
 0xb73   : > { %v2429_v57 = vadd.f32 %v2706_v54, %v2428_v55 }
 0xb75   : > { %2431 = vst [vmem:[#allocation3] sm:$0xff] %v2429_v57 }
 0xb76 PF: > { %p2658_p6 = scmp.eq.s32.totalorder %s2852_s25, 1  ;;  %s2755_s27 = smov [#allocation3]  }
 0xb77   : > { %s2438_s28 = sshll.u32 %s2755_s27, 4  ;;  %s3579_s26 = sld [smem:[#allocation15_spill]]  ;;  %s2439_s28 = int_to_ptr.vmem [resolvable:$true] %s2438_s28 }
 0xb7d   : > { %s2440_s23 = sshll.u32 %s3579_s26, 4  ;;  %s2441_s23 = int_to_ptr.hbm [resolvable:$true] %s2440_s23 }
 0xb7e   : > { %2655 = dma.vmem_to_hbm [thread:$0]  (%p2658_p6), %s2439_s28, 128, %s2441_s23, [#allocation4]  }
 0xb7f   : > { %2740 = dma.done.wait (%p2658_p6), [#allocation4], 128  }
 0xb80   : > { %2742 = vsyncadd (%p2658_p6), [#allocation4], 4294967168 }
 0xb81 PF: > { %s3580_s19 = sld [smem:[#allocation6_spill]] }
 0xb87   : > { %s28_s24 = sadd.s32 1, %s3580_s19  }
 0xb88   : > { %p25_p7 = scmp.ge.s32.totalorder %s28_s24, 4  }
 0xb8a   :  { %27 = sbr.rel (!%p25_p7) target bundleno = 10 (0xa), region = 156 }
 0xb8f   :  { %2454 = vsyncpa [#allocation4], 1 }
 0xb90   :  { %2456 = vsyncpa [#allocation4 + $0x1], 1 }

</bundles_post_ra>
